<compile_context>
chip_gen: v6e
topology: v6e:2x2x1
jax: 0.10.0
libtpu: 0.0.40
codegen_flags: <defaults>
</compile_context>

<pallas_src>
import jax
import jax.numpy as jnp
from jax.experimental import pallas as pl
from jax.experimental.pallas import tpu as pltpu


# ----------------------------- Pallas kernel -------------------------------

def _bilstm_recurrence_kernel(g_ref, whh_ref, o_ref, h_scr, c_scr):
    """Runs TT LSTM steps of one direction of one bidirectional layer.

    g_ref:   (TT, B, 4H) f32 gate pre-activations (x @ W_ih + b), time order.
    whh_ref: (H, 4H)     recurrent weights (matmul dtype, e.g. bf16).
    o_ref:   (TT, B, H)  f32 hidden-state outputs, time order.
    h_scr/c_scr: (B, H)  f32 carried state (scratch, persists across grid).
    """
    TT = g_ref.shape[0]
    H = whh_ref.shape[0]
    d = pl.program_id(0)        # 0 = forward direction, 1 = backward
    s = pl.program_id(1)        # position along the sequential time-block axis

    @pl.when(s == 0)
    def _():                    # start of this direction's sweep: zero state
        h_scr[...] = jnp.zeros_like(h_scr)
        c_scr[...] = jnp.zeros_like(c_scr)

    whh = whh_ref[...]

    def step(tt, carry):
        h, c = carry
        # forward walks rows 0..TT-1, backward walks rows TT-1..0
        row = jnp.where(d == 0, tt, TT - 1 - tt)
        g = g_ref[row] + jnp.dot(h.astype(whh.dtype), whh,
                                 preferred_element_type=jnp.float32)
        # PyTorch gate order [i, f, g, o]; slices are lane-aligned when
        # H % 128 == 0 (true for the real hidden_size=256), masked-but-correct
        # otherwise (toy H=32 below).
        i = jax.nn.sigmoid(g[:, 0 * H:1 * H])
        f = jax.nn.sigmoid(g[:, 1 * H:2 * H])
        gg = jnp.tanh(g[:, 2 * H:3 * H])
        o = jax.nn.sigmoid(g[:, 3 * H:4 * H])
        c_new = f * c + i * gg
        h_new = o * jnp.tanh(c_new)
        o_ref[row] = h_new
        return h_new, c_new

    h_fin, c_fin = jax.lax.fori_loop(0, TT, step, (h_scr[...], c_scr[...]),
                                     unroll=True)
    h_scr[...] = h_fin
    c_scr[...] = c_fin


# ------------------------------ wrappers ------------------------------------

def _vmem_limit_bytes():
    """Generation-dependent VMEM budget (half of physical, capped)."""
    cap = 128 * 1024 * 1024
    try:
        cap = int(getattr(pltpu.get_tpu_info(), "vmem_capacity_bytes", cap))
    except Exception:
        pass
    return int(min(96 * 1024 * 1024, max(32 * 1024 * 1024, cap // 2)))


def _bilstm_recurrence(gates, whh, *, tt=8):
    """gates: (2, T, B, 4H) f32 pre-activations (input proj + folded biases).
    whh:   (2, H, 4H) in the matmul dtype.
    Returns (2, T, B, H) f32 hidden states, both directions in time order."""
    _, T, B, G4 = gates.shape
    H = whh.shape[1]
    TT = max(1, min(tt, T))
    ns = pl.cdiv(T, TT)
    t_pad = ns * TT
    if t_pad != T:
        # "identity" pad rows: sigmoid(-1e9)=0 for i/f/o gates, g gate = 0,
        # so padded steps leave h = c = 0 exactly (safe for the reverse
        # direction, which consumes the padded tail first).
        neg = jnp.full((H,), -1e9, jnp.float32)
        zero = jnp.zeros((H,), jnp.float32)
        pad_row = jnp.concatenate([neg, neg, zero, neg])          # [i, f, g, o]
        pad = jnp.broadcast_to(pad_row, (2, t_pad - T, B, G4))
        gates = jnp.concatenate([gates, pad], axis=1)

    def time_block(d, s):     # fwd walks blocks 0..ns-1, rev walks ns-1..0
        return d * (ns - 1 - s) + (1 - d) * s

    out = pl.pallas_call(
        _bilstm_recurrence_kernel,
        out_shape=jax.ShapeDtypeStruct((2, t_pad, B, H), jnp.float32),
        grid_spec=pltpu.PrefetchScalarGridSpec(
            num_scalar_prefetch=0,
            grid=(2, ns),
            in_specs=[
                pl.BlockSpec((None, TT, B, G4),
                             lambda d, s: (d, time_block(d, s), 0, 0)),
                pl.BlockSpec((None, H, G4), lambda d, s: (d, 0, 0)),
            ],
            out_specs=pl.BlockSpec((None, TT, B, H),
                                   lambda d, s: (d, time_block(d, s), 0, 0)),
            scratch_shapes=[pltpu.VMEM((B, H), jnp.float32),    # h state
                            pltpu.VMEM((B, H), jnp.float32)],   # c state
        ),
        compiler_params=pltpu.CompilerParams(
            dimension_semantics=("parallel", "arbitrary"),
            vmem_limit_bytes=_vmem_limit_bytes(),
        ),
    )(gates, whh)
    return out[:, :T]


def _prep_layer(lp, compute_dtype):
    """PyTorch LSTM params -> stacked kernel layout.

    Returns wih (2, D, 4H) and whh (2, H, 4H) in compute_dtype, bias (2, 4H)
    f32 (b_ih + b_hh folded)."""
    wih = jnp.stack([jnp.asarray(lp["w_ih_f"], jnp.float32).T,
                     jnp.asarray(lp["w_ih_b"], jnp.float32).T]).astype(compute_dtype)
    whh = jnp.stack([jnp.asarray(lp["w_hh_f"], jnp.float32).T,
                     jnp.asarray(lp["w_hh_b"], jnp.float32).T]).astype(compute_dtype)
    bias = jnp.stack(
        [jnp.asarray(lp["b_ih_f"], jnp.float32) + jnp.asarray(lp["b_hh_f"], jnp.float32),
         jnp.asarray(lp["b_ih_b"], jnp.float32) + jnp.asarray(lp["b_hh_b"], jnp.float32)])
    return wih, whh, bias


def rnn_model_forward(inputs, layer_params, *, compute_dtype=jnp.bfloat16, tt=8):
    """RNNModel.forward: output of the stacked bidirectional LSTM.

    inputs: (B, T, input_size); layer_params: list of per-layer dicts holding
    PyTorch-convention tensors w_ih_{f,b} (4H, D), w_hh_{f,b} (4H, H),
    b_ih_{f,b}, b_hh_{f,b} (4H,).  Returns (B, T, 2H) float32.
    """
    x = jnp.transpose(jnp.asarray(inputs, jnp.float32), (1, 0, 2))   # (T, B, Din)
    prev = None                                     # (2, T, B, H) stacked dirs
    for li, lp in enumerate(layer_params):
        wih, whh, bias = _prep_layer(lp, compute_dtype)
        H = whh.shape[1]
        # Hoisted input projection for ALL time steps, both directions.
        if li == 0:
            g = jnp.einsum("tbi,dig->dtbg", x.astype(compute_dtype), wih,
                           preferred_element_type=jnp.float32)
        else:
            # Input of layer li is concat([fwd, bwd]); split W_ih instead of
            # concatenating the activations (no (T,B,2H) tensor materialised).
            wih_split = wih.reshape(2, 2, H, 4 * H)   # [dir, input-half, H, 4H]
            g = jnp.einsum("etbh,dehg->dtbg", prev.astype(compute_dtype),
                           wih_split, preferred_element_type=jnp.float32)
        g = g + bias[:, None, None, :]
        prev = _bilstm_recurrence(g, whh, tt=tt)       # (2, T, B, H) f32
    # TODO(synk): self.fc1 (nn.Linear) exists on the module but is unused in
    # forward(); omitted.
    out = jnp.concatenate([prev[0], prev[1]], axis=-1)  # (T, B, 2H)
    return jnp.transpose(out, (1, 0, 2))                # (B, T, 2H)


# --------------------------- pure-JAX reference ----------------------------

def _ref_forward(inputs, layer_params):
    h_in = inputs.astype(jnp.float32)
    for lp in layer_params:
        B, T, D = h_in.shape
        H = lp["w_hh_f"].shape[1]

        def run_dir(xs_btd, w_ih, w_hh, b_ih, b_hh):
            def step(carry, x_t):
                h, c = carry
                g = x_t @ w_ih.T + h @ w_hh.T + b_ih + b_hh
                i = jax.nn.sigmoid(g[:, 0 * H:1 * H])
                f = jax.nn.sigmoid(g[:, 1 * H:2 * H])
                gg = jnp.tanh(g[:, 2 * H:3 * H])
                o = jax.nn.sigmoid(g[:, 3 * H:4 * H])
                c = f * c + i * gg
                h = o * jnp.tanh(c)
                return (h, c), h

            init = (jnp.zeros((B, H), jnp.float32), jnp.zeros((B, H), jnp.float32))
            _, hs = jax.lax.scan(step, init, jnp.transpose(xs_btd, (1, 0, 2)))
            return jnp.transpose(hs, (1, 0, 2))       # (B, T, H)

        out_f = run_dir(h_in, lp["w_ih_f"], lp["w_hh_f"], lp["b_ih_f"], lp["b_hh_f"])
        out_b = run_dir(h_in[:, ::-1, :], lp["w_ih_b"], lp["w_hh_b"],
                        lp["b_ih_b"], lp["b_hh_b"])[:, ::-1, :]
        h_in = jnp.concatenate([out_f, out_b], axis=-1)
    return h_in


# --------------------------------- main -------------------------------------

if __name__ == "__main__":
    # Small stand-ins for (input_size=256, hidden_size=256, num_layers=6).
    # T=20 deliberately not a multiple of TT=8 to exercise the padded path.
    B, T, IN, H, NUM_LAYERS = 2, 20, 32, 32, 2

    key = jax.random.PRNGKey(0)
    key, kx = jax.random.split(key)
    x = jax.random.normal(kx, (B, T, IN), dtype=jnp.float32)

    layer_params = []
    for layer in range(NUM_LAYERS):
        D = IN if layer == 0 else 2 * H
        lp = {}
        for tag in ("f", "b"):
            key, k1, k2, k3, k4 = jax.random.split(key, 5)
            lp[f"w_ih_{tag}"] = 0.2 * jax.random.normal(k1, (4 * H, D), dtype=jnp.float32)
            lp[f"w_hh_{tag}"] = 0.2 * jax.random.normal(k2, (4 * H, H), dtype=jnp.float32)
            lp[f"b_ih_{tag}"] = 0.1 * jax.random.normal(k3, (4 * H,), dtype=jnp.float32)
            lp[f"b_hh_{tag}"] = 0.1 * jax.random.normal(k4, (4 * H,), dtype=jnp.float32)
        layer_params.append(lp)

    # f32 mode: exact semantics check against the pure-JAX reference.
    out_f32 = jax.block_until_ready(
        rnn_model_forward(x, layer_params, compute_dtype=jnp.float32))
    # bf16 mode: the performance configuration (bf16 matmuls, f32 state).
    out_bf16 = jax.block_until_ready(
        rnn_model_forward(x, layer_params, compute_dtype=jnp.bfloat16))
    ref = jax.block_until_ready(_ref_forward(x, layer_params))

    assert out_f32.shape == (B, T, 2 * H), out_f32.shape
    assert out_bf16.shape == (B, T, 2 * H), out_bf16.shape
    err_f32 = float(jnp.max(jnp.abs(out_f32 - ref)))
    err_bf16 = float(jnp.max(jnp.abs(out_bf16 - ref)))
    assert err_f32 < 1e-4, err_f32
    assert err_bf16 < 5e-2, err_bf16

    print("KERNEL_OK")
</pallas_src>

<mosaic_0001>
module attributes {stable_mosaic.version = 11 : i64} {
  func.func @_bilstm_recurrence_kernel(%arg0: i32, %arg1: i32, %arg2: memref<1x8x2x128xf32, #tpu.memory_space<vmem>>, %arg3: memref<1x32x128xf32, #tpu.memory_space<vmem>>, %arg4: memref<1x8x2x32xf32, #tpu.memory_space<vmem>>, %arg5: memref<2x32xf32, #tpu.memory_space<vmem>>, %arg6: memref<2x32xf32, #tpu.memory_space<vmem>>) attributes {dimension_semantics = [#tpu.dimension_semantics<parallel>, #tpu.dimension_semantics<arbitrary>], iteration_bounds = array<i64: 2, 3>, scalar_prefetch = 0 : i64, scratch_operands = 2 : i64, tpu.core_type = #tpu.core_type<tc>, window_params = [{transform_indices = @transform_0, window_bounds = array<i64: 1, 8, 2, 128>}, {transform_indices = @transform_1, window_bounds = array<i64: 1, 32, 128>}, {transform_indices = @transform_2, window_bounds = array<i64: 1, 8, 2, 32>}]} {
    %c0_i32 = arith.constant 0 : i32
    %0 = arith.cmpi eq, %arg1, %c0_i32 : i32
    %1 = arith.extui %0 : i1 to i32
    %c0_i32_0 = arith.constant 0 : i32
    %2 = arith.cmpi ne, %1, %c0_i32_0 : i32
    scf.if %2 {
      %cst_107 = arith.constant 0.000000e+00 : f32
      %305 = vector.broadcast %cst_107 : f32 to vector<2x32xf32>
      %c0_108 = arith.constant 0 : index
      %c0_109 = arith.constant 0 : index
      %306 = vector.load %arg5[%c0_108, %c0_109] : memref<2x32xf32, #tpu.memory_space<vmem>>, vector<2x32xf32>
      tpu.vector_store %arg5[%c0_108, %c0_109], %305 {strides = array<i32>} : memref<2x32xf32, #tpu.memory_space<vmem>>, vector<2x32xf32>,
      %cst_110 = arith.constant 0.000000e+00 : f32
      %307 = vector.broadcast %cst_110 : f32 to vector<2x32xf32>
      %c0_111 = arith.constant 0 : index
      %c0_112 = arith.constant 0 : index
      %308 = vector.load %arg6[%c0_111, %c0_112] : memref<2x32xf32, #tpu.memory_space<vmem>>, vector<2x32xf32>
      tpu.vector_store %arg6[%c0_111, %c0_112], %307 {strides = array<i32>} : memref<2x32xf32, #tpu.memory_space<vmem>>, vector<2x32xf32>,
    } else {
    }
    %c0 = arith.constant 0 : index
    %c0_1 = arith.constant 0 : index
    %c0_2 = arith.constant 0 : index
    %3 = vector.load %arg3[%c0, %c0_1, %c0_2] : memref<1x32x128xf32, #tpu.memory_space<vmem>>, vector<1x32x128xf32>
    %4 = vector.shape_cast %3 : vector<1x32x128xf32> to vector<32x128xf32>
    %c0_3 = arith.constant 0 : index
    %c0_4 = arith.constant 0 : index
    %5 = vector.load %arg5[%c0_3, %c0_4] : memref<2x32xf32, #tpu.memory_space<vmem>>, vector<2x32xf32>
    %c0_5 = arith.constant 0 : index
    %c0_6 = arith.constant 0 : index
    %6 = vector.load %arg6[%c0_5, %c0_6] : memref<2x32xf32, #tpu.memory_space<vmem>>, vector<2x32xf32>
    %c0_i32_7 = arith.constant 0 : i32
    %c0_i32_8 = arith.constant 0 : i32
    %7 = arith.cmpi eq, %arg0, %c0_i32_8 : i32
    %c7_i32 = arith.constant 7 : i32
    %8 = arith.subi %c7_i32, %c0_i32_7 : i32
    %9 = arith.select %7, %c0_i32_7, %8 : i32
    %c0_9 = arith.constant 0 : index
    %10 = arith.index_cast %9 : i32 to index
    %c0_10 = arith.constant 0 : index
    %c0_11 = arith.constant 0 : index
    %11 = vector.load %arg2[%c0_9, %10, %c0_10, %c0_11] : memref<1x8x2x128xf32, #tpu.memory_space<vmem>>, vector<1x1x2x128xf32>
    %12 = vector.shape_cast %11 : vector<1x1x2x128xf32> to vector<2x128xf32>
    %cst = arith.constant dense<0.000000e+00> : vector<2x128xf32>
    %13 = tpu.matmul %5, %4, %cst {dimension_numbers = #tpu.dot_dimension_numbers<[1], [0], [0], [1], [0, 0, 1, 1], [], []>} : vector<2x32xf32>, vector<32x128xf32>, vector<2x128xf32> -> vector<2x128xf32>
    %14 = arith.addf %12, %13 : vector<2x128xf32>
    %15 = vector.extract_strided_slice %14 {offsets = [0, 0], sizes = [2, 32], strides = [1, 1]} : vector<2x128xf32> to vector<2x32xf32>
    %16 = arith.negf %15 : vector<2x32xf32>
    %17 = math.exp %16 : vector<2x32xf32>
    %cst_12 = arith.constant 1.000000e+00 : f32
    %18 = vector.broadcast %cst_12 : f32 to vector<2x32xf32>
    %19 = arith.addf %18, %17 : vector<2x32xf32>
    %20 = arith.divf %18, %19 : vector<2x32xf32>
    %21 = vector.extract_strided_slice %14 {offsets = [0, 32], sizes = [2, 32], strides = [1, 1]} : vector<2x128xf32> to vector<2x32xf32>
    %22 = arith.negf %21 : vector<2x32xf32>
    %23 = math.exp %22 : vector<2x32xf32>
    %cst_13 = arith.constant 1.000000e+00 : f32
    %24 = vector.broadcast %cst_13 : f32 to vector<2x32xf32>
    %25 = arith.addf %24, %23 : vector<2x32xf32>
    %26 = arith.divf %24, %25 : vector<2x32xf32>
    %27 = vector.extract_strided_slice %14 {offsets = [0, 64], sizes = [2, 32], strides = [1, 1]} : vector<2x128xf32> to vector<2x32xf32>
    %28 = math.tanh %27 : vector<2x32xf32>
    %29 = vector.extract_strided_slice %14 {offsets = [0, 96], sizes = [2, 32], strides = [1, 1]} : vector<2x128xf32> to vector<2x32xf32>
    %30 = arith.negf %29 : vector<2x32xf32>
    %31 = math.exp %30 : vector<2x32xf32>
    %cst_14 = arith.constant 1.000000e+00 : f32
    %32 = vector.broadcast %cst_14 : f32 to vector<2x32xf32>
    %33 = arith.addf %32, %31 : vector<2x32xf32>
    %34 = arith.divf %32, %33 : vector<2x32xf32>
    %35 = arith.mulf %26, %6 : vector<2x32xf32>
    %36 = arith.mulf %20, %28 : vector<2x32xf32>
    %37 = arith.addf %35, %36 : vector<2x32xf32>
    %38 = math.tanh %37 : vector<2x32xf32>
    %39 = arith.mulf %34, %38 : vector<2x32xf32>
    %c0_15 = arith.constant 0 : index
    %40 = arith.index_cast %9 : i32 to index
    %c0_16 = arith.constant 0 : index
    %c0_17 = arith.constant 0 : index
    %41 = vector.load %arg4[%c0_15, %40, %c0_16, %c0_17] : memref<1x8x2x32xf32, #tpu.memory_space<vmem>>, vector<1x1x2x32xf32>
    %42 = vector.shape_cast %41 : vector<1x1x2x32xf32> to vector<2x32xf32>
    %43 = vector.shape_cast %39 : vector<2x32xf32> to vector<1x1x2x32xf32>
    tpu.vector_store %arg4[%c0_15, %40, %c0_16, %c0_17], %43 {strides = array<i32>} : memref<1x8x2x32xf32, #tpu.memory_space<vmem>>, vector<1x1x2x32xf32>,
    %c1_i32 = arith.constant 1 : i32
    %c0_i32_18 = arith.constant 0 : i32
    %44 = arith.cmpi eq, %arg0, %c0_i32_18 : i32
    %c7_i32_19 = arith.constant 7 : i32
    %45 = arith.subi %c7_i32_19, %c1_i32 : i32
    %46 = arith.select %44, %c1_i32, %45 : i32
    %c0_20 = arith.constant 0 : index
    %47 = arith.index_cast %46 : i32 to index
    %c0_21 = arith.constant 0 : index
    %c0_22 = arith.constant 0 : index
    %48 = vector.load %arg2[%c0_20, %47, %c0_21, %c0_22] : memref<1x8x2x128xf32, #tpu.memory_space<vmem>>, vector<1x1x2x128xf32>
    %49 = vector.shape_cast %48 : vector<1x1x2x128xf32> to vector<2x128xf32>
    %cst_23 = arith.constant dense<0.000000e+00> : vector<2x128xf32>
    %50 = tpu.matmul %39, %4, %cst_23 {dimension_numbers = #tpu.dot_dimension_numbers<[1], [0], [0], [1], [0, 0, 1, 1], [], []>} : vector<2x32xf32>, vector<32x128xf32>, vector<2x128xf32> -> vector<2x128xf32>
    %51 = arith.addf %49, %50 : vector<2x128xf32>
    %52 = vector.extract_strided_slice %51 {offsets = [0, 0], sizes = [2, 32], strides = [1, 1]} : vector<2x128xf32> to vector<2x32xf32>
    %53 = arith.negf %52 : vector<2x32xf32>
    %54 = math.exp %53 : vector<2x32xf32>
    %cst_24 = arith.constant 1.000000e+00 : f32
    %55 = vector.broadcast %cst_24 : f32 to vector<2x32xf32>
    %56 = arith.addf %55, %54 : vector<2x32xf32>
    %57 = arith.divf %55, %56 : vector<2x32xf32>
    %58 = vector.extract_strided_slice %51 {offsets = [0, 32], sizes = [2, 32], strides = [1, 1]} : vector<2x128xf32> to vector<2x32xf32>
    %59 = arith.negf %58 : vector<2x32xf32>
    %60 = math.exp %59 : vector<2x32xf32>
    %cst_25 = arith.constant 1.000000e+00 : f32
    %61 = vector.broadcast %cst_25 : f32 to vector<2x32xf32>
    %62 = arith.addf %61, %60 : vector<2x32xf32>
    %63 = arith.divf %61, %62 : vector<2x32xf32>
    %64 = vector.extract_strided_slice %51 {offsets = [0, 64], sizes = [2, 32], strides = [1, 1]} : vector<2x128xf32> to vector<2x32xf32>
    %65 = math.tanh %64 : vector<2x32xf32>
    %66 = vector.extract_strided_slice %51 {offsets = [0, 96], sizes = [2, 32], strides = [1, 1]} : vector<2x128xf32> to vector<2x32xf32>
    %67 = arith.negf %66 : vector<2x32xf32>
    %68 = math.exp %67 : vector<2x32xf32>
    %cst_26 = arith.constant 1.000000e+00 : f32
    %69 = vector.broadcast %cst_26 : f32 to vector<2x32xf32>
    %70 = arith.addf %69, %68 : vector<2x32xf32>
    %71 = arith.divf %69, %70 : vector<2x32xf32>
    %72 = arith.mulf %63, %37 : vector<2x32xf32>
    %73 = arith.mulf %57, %65 : vector<2x32xf32>
    %74 = arith.addf %72, %73 : vector<2x32xf32>
    %75 = math.tanh %74 : vector<2x32xf32>
    %76 = arith.mulf %71, %75 : vector<2x32xf32>
    %c0_27 = arith.constant 0 : index
    %77 = arith.index_cast %46 : i32 to index
    %c0_28 = arith.constant 0 : index
    %c0_29 = arith.constant 0 : index
    %78 = vector.load %arg4[%c0_27, %77, %c0_28, %c0_29] : memref<1x8x2x32xf32, #tpu.memory_space<vmem>>, vector<1x1x2x32xf32>
    %79 = vector.shape_cast %78 : vector<1x1x2x32xf32> to vector<2x32xf32>
    %80 = vector.shape_cast %76 : vector<2x32xf32> to vector<1x1x2x32xf32>
    tpu.vector_store %arg4[%c0_27, %77, %c0_28, %c0_29], %80 {strides = array<i32>} : memref<1x8x2x32xf32, #tpu.memory_space<vmem>>, vector<1x1x2x32xf32>,
    %c2_i32 = arith.constant 2 : i32
    %c0_i32_30 = arith.constant 0 : i32
    %81 = arith.cmpi eq, %arg0, %c0_i32_30 : i32
    %c7_i32_31 = arith.constant 7 : i32
    %82 = arith.subi %c7_i32_31, %c2_i32 : i32
    %83 = arith.select %81, %c2_i32, %82 : i32
    %c0_32 = arith.constant 0 : index
    %84 = arith.index_cast %83 : i32 to index
    %c0_33 = arith.constant 0 : index
    %c0_34 = arith.constant 0 : index
    %85 = vector.load %arg2[%c0_32, %84, %c0_33, %c0_34] : memref<1x8x2x128xf32, #tpu.memory_space<vmem>>, vector<1x1x2x128xf32>
    %86 = vector.shape_cast %85 : vector<1x1x2x128xf32> to vector<2x128xf32>
    %cst_35 = arith.constant dense<0.000000e+00> : vector<2x128xf32>
    %87 = tpu.matmul %76, %4, %cst_35 {dimension_numbers = #tpu.dot_dimension_numbers<[1], [0], [0], [1], [0, 0, 1, 1], [], []>} : vector<2x32xf32>, vector<32x128xf32>, vector<2x128xf32> -> vector<2x128xf32>
    %88 = arith.addf %86, %87 : vector<2x128xf32>
    %89 = vector.extract_strided_slice %88 {offsets = [0, 0], sizes = [2, 32], strides = [1, 1]} : vector<2x128xf32> to vector<2x32xf32>
    %90 = arith.negf %89 : vector<2x32xf32>
    %91 = math.exp %90 : vector<2x32xf32>
    %cst_36 = arith.constant 1.000000e+00 : f32
    %92 = vector.broadcast %cst_36 : f32 to vector<2x32xf32>
    %93 = arith.addf %92, %91 : vector<2x32xf32>
    %94 = arith.divf %92, %93 : vector<2x32xf32>
    %95 = vector.extract_strided_slice %88 {offsets = [0, 32], sizes = [2, 32], strides = [1, 1]} : vector<2x128xf32> to vector<2x32xf32>
    %96 = arith.negf %95 : vector<2x32xf32>
    %97 = math.exp %96 : vector<2x32xf32>
    %cst_37 = arith.constant 1.000000e+00 : f32
    %98 = vector.broadcast %cst_37 : f32 to vector<2x32xf32>
    %99 = arith.addf %98, %97 : vector<2x32xf32>
    %100 = arith.divf %98, %99 : vector<2x32xf32>
    %101 = vector.extract_strided_slice %88 {offsets = [0, 64], sizes = [2, 32], strides = [1, 1]} : vector<2x128xf32> to vector<2x32xf32>
    %102 = math.tanh %101 : vector<2x32xf32>
    %103 = vector.extract_strided_slice %88 {offsets = [0, 96], sizes = [2, 32], strides = [1, 1]} : vector<2x128xf32> to vector<2x32xf32>
    %104 = arith.negf %103 : vector<2x32xf32>
    %105 = math.exp %104 : vector<2x32xf32>
    %cst_38 = arith.constant 1.000000e+00 : f32
    %106 = vector.broadcast %cst_38 : f32 to vector<2x32xf32>
    %107 = arith.addf %106, %105 : vector<2x32xf32>
    %108 = arith.divf %106, %107 : vector<2x32xf32>
    %109 = arith.mulf %100, %74 : vector<2x32xf32>
    %110 = arith.mulf %94, %102 : vector<2x32xf32>
    %111 = arith.addf %109, %110 : vector<2x32xf32>
    %112 = math.tanh %111 : vector<2x32xf32>
    %113 = arith.mulf %108, %112 : vector<2x32xf32>
    %c0_39 = arith.constant 0 : index
    %114 = arith.index_cast %83 : i32 to index
    %c0_40 = arith.constant 0 : index
    %c0_41 = arith.constant 0 : index
    %115 = vector.load %arg4[%c0_39, %114, %c0_40, %c0_41] : memref<1x8x2x32xf32, #tpu.memory_space<vmem>>, vector<1x1x2x32xf32>
    %116 = vector.shape_cast %115 : vector<1x1x2x32xf32> to vector<2x32xf32>
    %117 = vector.shape_cast %113 : vector<2x32xf32> to vector<1x1x2x32xf32>
    tpu.vector_store %arg4[%c0_39, %114, %c0_40, %c0_41], %117 {strides = array<i32>} : memref<1x8x2x32xf32, #tpu.memory_space<vmem>>, vector<1x1x2x32xf32>,
    %c3_i32 = arith.constant 3 : i32
    %c0_i32_42 = arith.constant 0 : i32
    %118 = arith.cmpi eq, %arg0, %c0_i32_42 : i32
    %c7_i32_43 = arith.constant 7 : i32
    %119 = arith.subi %c7_i32_43, %c3_i32 : i32
    %120 = arith.select %118, %c3_i32, %119 : i32
    %c0_44 = arith.constant 0 : index
    %121 = arith.index_cast %120 : i32 to index
    %c0_45 = arith.constant 0 : index
    %c0_46 = arith.constant 0 : index
    %122 = vector.load %arg2[%c0_44, %121, %c0_45, %c0_46] : memref<1x8x2x128xf32, #tpu.memory_space<vmem>>, vector<1x1x2x128xf32>
    %123 = vector.shape_cast %122 : vector<1x1x2x128xf32> to vector<2x128xf32>
    %cst_47 = arith.constant dense<0.000000e+00> : vector<2x128xf32>
    %124 = tpu.matmul %113, %4, %cst_47 {dimension_numbers = #tpu.dot_dimension_numbers<[1], [0], [0], [1], [0, 0, 1, 1], [], []>} : vector<2x32xf32>, vector<32x128xf32>, vector<2x128xf32> -> vector<2x128xf32>
    %125 = arith.addf %123, %124 : vector<2x128xf32>
    %126 = vector.extract_strided_slice %125 {offsets = [0, 0], sizes = [2, 32], strides = [1, 1]} : vector<2x128xf32> to vector<2x32xf32>
    %127 = arith.negf %126 : vector<2x32xf32>
    %128 = math.exp %127 : vector<2x32xf32>
    %cst_48 = arith.constant 1.000000e+00 : f32
    %129 = vector.broadcast %cst_48 : f32 to vector<2x32xf32>
    %130 = arith.addf %129, %128 : vector<2x32xf32>
    %131 = arith.divf %129, %130 : vector<2x32xf32>
    %132 = vector.extract_strided_slice %125 {offsets = [0, 32], sizes = [2, 32], strides = [1, 1]} : vector<2x128xf32> to vector<2x32xf32>
    %133 = arith.negf %132 : vector<2x32xf32>
    %134 = math.exp %133 : vector<2x32xf32>
    %cst_49 = arith.constant 1.000000e+00 : f32
    %135 = vector.broadcast %cst_49 : f32 to vector<2x32xf32>
    %136 = arith.addf %135, %134 : vector<2x32xf32>
    %137 = arith.divf %135, %136 : vector<2x32xf32>
    %138 = vector.extract_strided_slice %125 {offsets = [0, 64], sizes = [2, 32], strides = [1, 1]} : vector<2x128xf32> to vector<2x32xf32>
    %139 = math.tanh %138 : vector<2x32xf32>
    %140 = vector.extract_strided_slice %125 {offsets = [0, 96], sizes = [2, 32], strides = [1, 1]} : vector<2x128xf32> to vector<2x32xf32>
    %141 = arith.negf %140 : vector<2x32xf32>
    %142 = math.exp %141 : vector<2x32xf32>
    %cst_50 = arith.constant 1.000000e+00 : f32
    %143 = vector.broadcast %cst_50 : f32 to vector<2x32xf32>
    %144 = arith.addf %143, %142 : vector<2x32xf32>
    %145 = arith.divf %143, %144 : vector<2x32xf32>
    %146 = arith.mulf %137, %111 : vector<2x32xf32>
    %147 = arith.mulf %131, %139 : vector<2x32xf32>
    %148 = arith.addf %146, %147 : vector<2x32xf32>
    %149 = math.tanh %148 : vector<2x32xf32>
    %150 = arith.mulf %145, %149 : vector<2x32xf32>
    %c0_51 = arith.constant 0 : index
    %151 = arith.index_cast %120 : i32 to index
    %c0_52 = arith.constant 0 : index
    %c0_53 = arith.constant 0 : index
    %152 = vector.load %arg4[%c0_51, %151, %c0_52, %c0_53] : memref<1x8x2x32xf32, #tpu.memory_space<vmem>>, vector<1x1x2x32xf32>
    %153 = vector.shape_cast %152 : vector<1x1x2x32xf32> to vector<2x32xf32>
    %154 = vector.shape_cast %150 : vector<2x32xf32> to vector<1x1x2x32xf32>
    tpu.vector_store %arg4[%c0_51, %151, %c0_52, %c0_53], %154 {strides = array<i32>} : memref<1x8x2x32xf32, #tpu.memory_space<vmem>>, vector<1x1x2x32xf32>,
    %c4_i32 = arith.constant 4 : i32
    %c0_i32_54 = arith.constant 0 : i32
    %155 = arith.cmpi eq, %arg0, %c0_i32_54 : i32
    %c7_i32_55 = arith.constant 7 : i32
    %156 = arith.subi %c7_i32_55, %c4_i32 : i32
    %157 = arith.select %155, %c4_i32, %156 : i32
    %c0_56 = arith.constant 0 : index
    %158 = arith.index_cast %157 : i32 to index
    %c0_57 = arith.constant 0 : index
    %c0_58 = arith.constant 0 : index
    %159 = vector.load %arg2[%c0_56, %158, %c0_57, %c0_58] : memref<1x8x2x128xf32, #tpu.memory_space<vmem>>, vector<1x1x2x128xf32>
    %160 = vector.shape_cast %159 : vector<1x1x2x128xf32> to vector<2x128xf32>
    %cst_59 = arith.constant dense<0.000000e+00> : vector<2x128xf32>
    %161 = tpu.matmul %150, %4, %cst_59 {dimension_numbers = #tpu.dot_dimension_numbers<[1], [0], [0], [1], [0, 0, 1, 1], [], []>} : vector<2x32xf32>, vector<32x128xf32>, vector<2x128xf32> -> vector<2x128xf32>
    %162 = arith.addf %160, %161 : vector<2x128xf32>
    %163 = vector.extract_strided_slice %162 {offsets = [0, 0], sizes = [2, 32], strides = [1, 1]} : vector<2x128xf32> to vector<2x32xf32>
    %164 = arith.negf %163 : vector<2x32xf32>
    %165 = math.exp %164 : vector<2x32xf32>
    %cst_60 = arith.constant 1.000000e+00 : f32
    %166 = vector.broadcast %cst_60 : f32 to vector<2x32xf32>
    %167 = arith.addf %166, %165 : vector<2x32xf32>
    %168 = arith.divf %166, %167 : vector<2x32xf32>
    %169 = vector.extract_strided_slice %162 {offsets = [0, 32], sizes = [2, 32], strides = [1, 1]} : vector<2x128xf32> to vector<2x32xf32>
    %170 = arith.negf %169 : vector<2x32xf32>
    %171 = math.exp %170 : vector<2x32xf32>
    %cst_61 = arith.constant 1.000000e+00 : f32
    %172 = vector.broadcast %cst_61 : f32 to vector<2x32xf32>
    %173 = arith.addf %172, %171 : vector<2x32xf32>
    %174 = arith.divf %172, %173 : vector<2x32xf32>
    %175 = vector.extract_strided_slice %162 {offsets = [0, 64], sizes = [2, 32], strides = [1, 1]} : vector<2x128xf32> to vector<2x32xf32>
    %176 = math.tanh %175 : vector<2x32xf32>
    %177 = vector.extract_strided_slice %162 {offsets = [0, 96], sizes = [2, 32], strides = [1, 1]} : vector<2x128xf32> to vector<2x32xf32>
    %178 = arith.negf %177 : vector<2x32xf32>
    %179 = math.exp %178 : vector<2x32xf32>
    %cst_62 = arith.constant 1.000000e+00 : f32
    %180 = vector.broadcast %cst_62 : f32 to vector<2x32xf32>
    %181 = arith.addf %180, %179 : vector<2x32xf32>
    %182 = arith.divf %180, %181 : vector<2x32xf32>
    %183 = arith.mulf %174, %148 : vector<2x32xf32>
    %184 = arith.mulf %168, %176 : vector<2x32xf32>
    %185 = arith.addf %183, %184 : vector<2x32xf32>
    %186 = math.tanh %185 : vector<2x32xf32>
    %187 = arith.mulf %182, %186 : vector<2x32xf32>
    %c0_63 = arith.constant 0 : index
    %188 = arith.index_cast %157 : i32 to index
    %c0_64 = arith.constant 0 : index
    %c0_65 = arith.constant 0 : index
    %189 = vector.load %arg4[%c0_63, %188, %c0_64, %c0_65] : memref<1x8x2x32xf32, #tpu.memory_space<vmem>>, vector<1x1x2x32xf32>
    %190 = vector.shape_cast %189 : vector<1x1x2x32xf32> to vector<2x32xf32>
    %191 = vector.shape_cast %187 : vector<2x32xf32> to vector<1x1x2x32xf32>
    tpu.vector_store %arg4[%c0_63, %188, %c0_64, %c0_65], %191 {strides = array<i32>} : memref<1x8x2x32xf32, #tpu.memory_space<vmem>>, vector<1x1x2x32xf32>,
    %c5_i32 = arith.constant 5 : i32
    %c0_i32_66 = arith.constant 0 : i32
    %192 = arith.cmpi eq, %arg0, %c0_i32_66 : i32
    %c7_i32_67 = arith.constant 7 : i32
    %193 = arith.subi %c7_i32_67, %c5_i32 : i32
    %194 = arith.select %192, %c5_i32, %193 : i32
    %c0_68 = arith.constant 0 : index
    %195 = arith.index_cast %194 : i32 to index
    %c0_69 = arith.constant 0 : index
    %c0_70 = arith.constant 0 : index
    %196 = vector.load %arg2[%c0_68, %195, %c0_69, %c0_70] : memref<1x8x2x128xf32, #tpu.memory_space<vmem>>, vector<1x1x2x128xf32>
    %197 = vector.shape_cast %196 : vector<1x1x2x128xf32> to vector<2x128xf32>
    %cst_71 = arith.constant dense<0.000000e+00> : vector<2x128xf32>
    %198 = tpu.matmul %187, %4, %cst_71 {dimension_numbers = #tpu.dot_dimension_numbers<[1], [0], [0], [1], [0, 0, 1, 1], [], []>} : vector<2x32xf32>, vector<32x128xf32>, vector<2x128xf32> -> vector<2x128xf32>
    %199 = arith.addf %197, %198 : vector<2x128xf32>
    %200 = vector.extract_strided_slice %199 {offsets = [0, 0], sizes = [2, 32], strides = [1, 1]} : vector<2x128xf32> to vector<2x32xf32>
    %201 = arith.negf %200 : vector<2x32xf32>
    %202 = math.exp %201 : vector<2x32xf32>
    %cst_72 = arith.constant 1.000000e+00 : f32
    %203 = vector.broadcast %cst_72 : f32 to vector<2x32xf32>
    %204 = arith.addf %203, %202 : vector<2x32xf32>
    %205 = arith.divf %203, %204 : vector<2x32xf32>
    %206 = vector.extract_strided_slice %199 {offsets = [0, 32], sizes = [2, 32], strides = [1, 1]} : vector<2x128xf32> to vector<2x32xf32>
    %207 = arith.negf %206 : vector<2x32xf32>
    %208 = math.exp %207 : vector<2x32xf32>
    %cst_73 = arith.constant 1.000000e+00 : f32
    %209 = vector.broadcast %cst_73 : f32 to vector<2x32xf32>
    %210 = arith.addf %209, %208 : vector<2x32xf32>
    %211 = arith.divf %209, %210 : vector<2x32xf32>
    %212 = vector.extract_strided_slice %199 {offsets = [0, 64], sizes = [2, 32], strides = [1, 1]} : vector<2x128xf32> to vector<2x32xf32>
    %213 = math.tanh %212 : vector<2x32xf32>
    %214 = vector.extract_strided_slice %199 {offsets = [0, 96], sizes = [2, 32], strides = [1, 1]} : vector<2x128xf32> to vector<2x32xf32>
    %215 = arith.negf %214 : vector<2x32xf32>
    %216 = math.exp %215 : vector<2x32xf32>
    %cst_74 = arith.constant 1.000000e+00 : f32
    %217 = vector.broadcast %cst_74 : f32 to vector<2x32xf32>
    %218 = arith.addf %217, %216 : vector<2x32xf32>
    %219 = arith.divf %217, %218 : vector<2x32xf32>
    %220 = arith.mulf %211, %185 : vector<2x32xf32>
    %221 = arith.mulf %205, %213 : vector<2x32xf32>
    %222 = arith.addf %220, %221 : vector<2x32xf32>
    %223 = math.tanh %222 : vector<2x32xf32>
    %224 = arith.mulf %219, %223 : vector<2x32xf32>
    %c0_75 = arith.constant 0 : index
    %225 = arith.index_cast %194 : i32 to index
    %c0_76 = arith.constant 0 : index
    %c0_77 = arith.constant 0 : index
    %226 = vector.load %arg4[%c0_75, %225, %c0_76, %c0_77] : memref<1x8x2x32xf32, #tpu.memory_space<vmem>>, vector<1x1x2x32xf32>
    %227 = vector.shape_cast %226 : vector<1x1x2x32xf32> to vector<2x32xf32>
    %228 = vector.shape_cast %224 : vector<2x32xf32> to vector<1x1x2x32xf32>
    tpu.vector_store %arg4[%c0_75, %225, %c0_76, %c0_77], %228 {strides = array<i32>} : memref<1x8x2x32xf32, #tpu.memory_space<vmem>>, vector<1x1x2x32xf32>,
    %c6_i32 = arith.constant 6 : i32
    %c0_i32_78 = arith.constant 0 : i32
    %229 = arith.cmpi eq, %arg0, %c0_i32_78 : i32
    %c7_i32_79 = arith.constant 7 : i32
    %230 = arith.subi %c7_i32_79, %c6_i32 : i32
    %231 = arith.select %229, %c6_i32, %230 : i32
    %c0_80 = arith.constant 0 : index
    %232 = arith.index_cast %231 : i32 to index
    %c0_81 = arith.constant 0 : index
    %c0_82 = arith.constant 0 : index
    %233 = vector.load %arg2[%c0_80, %232, %c0_81, %c0_82] : memref<1x8x2x128xf32, #tpu.memory_space<vmem>>, vector<1x1x2x128xf32>
    %234 = vector.shape_cast %233 : vector<1x1x2x128xf32> to vector<2x128xf32>
    %cst_83 = arith.constant dense<0.000000e+00> : vector<2x128xf32>
    %235 = tpu.matmul %224, %4, %cst_83 {dimension_numbers = #tpu.dot_dimension_numbers<[1], [0], [0], [1], [0, 0, 1, 1], [], []>} : vector<2x32xf32>, vector<32x128xf32>, vector<2x128xf32> -> vector<2x128xf32>
    %236 = arith.addf %234, %235 : vector<2x128xf32>
    %237 = vector.extract_strided_slice %236 {offsets = [0, 0], sizes = [2, 32], strides = [1, 1]} : vector<2x128xf32> to vector<2x32xf32>
    %238 = arith.negf %237 : vector<2x32xf32>
    %239 = math.exp %238 : vector<2x32xf32>
    %cst_84 = arith.constant 1.000000e+00 : f32
    %240 = vector.broadcast %cst_84 : f32 to vector<2x32xf32>
    %241 = arith.addf %240, %239 : vector<2x32xf32>
    %242 = arith.divf %240, %241 : vector<2x32xf32>
    %243 = vector.extract_strided_slice %236 {offsets = [0, 32], sizes = [2, 32], strides = [1, 1]} : vector<2x128xf32> to vector<2x32xf32>
    %244 = arith.negf %243 : vector<2x32xf32>
    %245 = math.exp %244 : vector<2x32xf32>
    %cst_85 = arith.constant 1.000000e+00 : f32
    %246 = vector.broadcast %cst_85 : f32 to vector<2x32xf32>
    %247 = arith.addf %246, %245 : vector<2x32xf32>
    %248 = arith.divf %246, %247 : vector<2x32xf32>
    %249 = vector.extract_strided_slice %236 {offsets = [0, 64], sizes = [2, 32], strides = [1, 1]} : vector<2x128xf32> to vector<2x32xf32>
    %250 = math.tanh %249 : vector<2x32xf32>
    %251 = vector.extract_strided_slice %236 {offsets = [0, 96], sizes = [2, 32], strides = [1, 1]} : vector<2x128xf32> to vector<2x32xf32>
    %252 = arith.negf %251 : vector<2x32xf32>
    %253 = math.exp %252 : vector<2x32xf32>
    %cst_86 = arith.constant 1.000000e+00 : f32
    %254 = vector.broadcast %cst_86 : f32 to vector<2x32xf32>
    %255 = arith.addf %254, %253 : vector<2x32xf32>
    %256 = arith.divf %254, %255 : vector<2x32xf32>
    %257 = arith.mulf %248, %222 : vector<2x32xf32>
    %258 = arith.mulf %242, %250 : vector<2x32xf32>
    %259 = arith.addf %257, %258 : vector<2x32xf32>
    %260 = math.tanh %259 : vector<2x32xf32>
    %261 = arith.mulf %256, %260 : vector<2x32xf32>
    %c0_87 = arith.constant 0 : index
    %262 = arith.index_cast %231 : i32 to index
    %c0_88 = arith.constant 0 : index
    %c0_89 = arith.constant 0 : index
    %263 = vector.load %arg4[%c0_87, %262, %c0_88, %c0_89] : memref<1x8x2x32xf32, #tpu.memory_space<vmem>>, vector<1x1x2x32xf32>
    %264 = vector.shape_cast %263 : vector<1x1x2x32xf32> to vector<2x32xf32>
    %265 = vector.shape_cast %261 : vector<2x32xf32> to vector<1x1x2x32xf32>
    tpu.vector_store %arg4[%c0_87, %262, %c0_88, %c0_89], %265 {strides = array<i32>} : memref<1x8x2x32xf32, #tpu.memory_space<vmem>>, vector<1x1x2x32xf32>,
    %c7_i32_90 = arith.constant 7 : i32
    %c0_i32_91 = arith.constant 0 : i32
    %266 = arith.cmpi eq, %arg0, %c0_i32_91 : i32
    %c7_i32_92 = arith.constant 7 : i32
    %267 = arith.subi %c7_i32_92, %c7_i32_90 : i32
    %268 = arith.select %266, %c7_i32_90, %267 : i32
    %c0_93 = arith.constant 0 : index
    %269 = arith.index_cast %268 : i32 to index
    %c0_94 = arith.constant 0 : index
    %c0_95 = arith.constant 0 : index
    %270 = vector.load %arg2[%c0_93, %269, %c0_94, %c0_95] : memref<1x8x2x128xf32, #tpu.memory_space<vmem>>, vector<1x1x2x128xf32>
    %271 = vector.shape_cast %270 : vector<1x1x2x128xf32> to vector<2x128xf32>
    %cst_96 = arith.constant dense<0.000000e+00> : vector<2x128xf32>
    %272 = tpu.matmul %261, %4, %cst_96 {dimension_numbers = #tpu.dot_dimension_numbers<[1], [0], [0], [1], [0, 0, 1, 1], [], []>} : vector<2x32xf32>, vector<32x128xf32>, vector<2x128xf32> -> vector<2x128xf32>
    %273 = arith.addf %271, %272 : vector<2x128xf32>
    %274 = vector.extract_strided_slice %273 {offsets = [0, 0], sizes = [2, 32], strides = [1, 1]} : vector<2x128xf32> to vector<2x32xf32>
    %275 = arith.negf %274 : vector<2x32xf32>
    %276 = math.exp %275 : vector<2x32xf32>
    %cst_97 = arith.constant 1.000000e+00 : f32
    %277 = vector.broadcast %cst_97 : f32 to vector<2x32xf32>
    %278 = arith.addf %277, %276 : vector<2x32xf32>
    %279 = arith.divf %277, %278 : vector<2x32xf32>
    %280 = vector.extract_strided_slice %273 {offsets = [0, 32], sizes = [2, 32], strides = [1, 1]} : vector<2x128xf32> to vector<2x32xf32>
    %281 = arith.negf %280 : vector<2x32xf32>
    %282 = math.exp %281 : vector<2x32xf32>
    %cst_98 = arith.constant 1.000000e+00 : f32
    %283 = vector.broadcast %cst_98 : f32 to vector<2x32xf32>
    %284 = arith.addf %283, %282 : vector<2x32xf32>
    %285 = arith.divf %283, %284 : vector<2x32xf32>
    %286 = vector.extract_strided_slice %273 {offsets = [0, 64], sizes = [2, 32], strides = [1, 1]} : vector<2x128xf32> to vector<2x32xf32>
    %287 = math.tanh %286 : vector<2x32xf32>
    %288 = vector.extract_strided_slice %273 {offsets = [0, 96], sizes = [2, 32], strides = [1, 1]} : vector<2x128xf32> to vector<2x32xf32>
    %289 = arith.negf %288 : vector<2x32xf32>
    %290 = math.exp %289 : vector<2x32xf32>
    %cst_99 = arith.constant 1.000000e+00 : f32
    %291 = vector.broadcast %cst_99 : f32 to vector<2x32xf32>
    %292 = arith.addf %291, %290 : vector<2x32xf32>
    %293 = arith.divf %291, %292 : vector<2x32xf32>
    %294 = arith.mulf %285, %259 : vector<2x32xf32>
    %295 = arith.mulf %279, %287 : vector<2x32xf32>
    %296 = arith.addf %294, %295 : vector<2x32xf32>
    %297 = math.tanh %296 : vector<2x32xf32>
    %298 = arith.mulf %293, %297 : vector<2x32xf32>
    %c0_100 = arith.constant 0 : index
    %299 = arith.index_cast %268 : i32 to index
    %c0_101 = arith.constant 0 : index
    %c0_102 = arith.constant 0 : index
    %300 = vector.load %arg4[%c0_100, %299, %c0_101, %c0_102] : memref<1x8x2x32xf32, #tpu.memory_space<vmem>>, vector<1x1x2x32xf32>
    %301 = vector.shape_cast %300 : vector<1x1x2x32xf32> to vector<2x32xf32>
    %302 = vector.shape_cast %298 : vector<2x32xf32> to vector<1x1x2x32xf32>
    tpu.vector_store %arg4[%c0_100, %299, %c0_101, %c0_102], %302 {strides = array<i32>} : memref<1x8x2x32xf32, #tpu.memory_space<vmem>>, vector<1x1x2x32xf32>,
    %c8_i32 = arith.constant 8 : i32
    %c0_103 = arith.constant 0 : index
    %c0_104 = arith.constant 0 : index
    %303 = vector.load %arg5[%c0_103, %c0_104] : memref<2x32xf32, #tpu.memory_space<vmem>>, vector<2x32xf32>
    tpu.vector_store %arg5[%c0_103, %c0_104], %298 {strides = array<i32>} : memref<2x32xf32, #tpu.memory_space<vmem>>, vector<2x32xf32>,
    %c0_105 = arith.constant 0 : index
    %c0_106 = arith.constant 0 : index
    %304 = vector.load %arg6[%c0_105, %c0_106] : memref<2x32xf32, #tpu.memory_space<vmem>>, vector<2x32xf32>
    tpu.vector_store %arg6[%c0_105, %c0_106], %296 {strides = array<i32>} : memref<2x32xf32, #tpu.memory_space<vmem>>, vector<2x32xf32>,
    return
  }
  func.func @transform_0(%arg0: i32, %arg1: i32) -> (i32, i32, i32, i32) {
    %c2_i32 = arith.constant 2 : i32
    %0 = arith.subi %c2_i32, %arg1 : i32
    %1 = arith.muli %arg0, %0 : i32
    %c1_i32 = arith.constant 1 : i32
    %2 = arith.subi %c1_i32, %arg0 : i32
    %3 = arith.muli %2, %arg1 : i32
    %4 = arith.addi %1, %3 : i32
    %c0_i32 = arith.constant 0 : i32
    %c0_i32_0 = arith.constant 0 : i32
    %c0_i32_1 = arith.constant 0 : i32
    return %arg0, %4, %c0_i32, %c0_i32_0 : i32, i32, i32, i32
  }
  func.func @transform_1(%arg0: i32, %arg1: i32) -> (i32, i32, i32) {
    %c0_i32 = arith.constant 0 : i32
    %c0_i32_0 = arith.constant 0 : i32
    %c0_i32_1 = arith.constant 0 : i32
    return %arg0, %c0_i32, %c0_i32_0 : i32, i32, i32
  }
  func.func @transform_2(%arg0: i32, %arg1: i32) -> (i32, i32, i32, i32) {
    %c2_i32 = arith.constant 2 : i32
    %0 = arith.subi %c2_i32, %arg1 : i32
    %1 = arith.muli %arg0, %0 : i32
    %c1_i32 = arith.constant 1 : i32
    %2 = arith.subi %c1_i32, %arg0 : i32
    %3 = arith.muli %2, %arg1 : i32
    %4 = arith.addi %1, %3 : i32
    %c0_i32 = arith.constant 0 : i32
    %c0_i32_0 = arith.constant 0 : i32
    %c0_i32_1 = arith.constant 0 : i32
    return %arg0, %4, %c0_i32, %c0_i32_0 : i32, i32, i32, i32
  }
}

</mosaic_0001>

<bundles_post_ra>
// kernel: tpu_custom_call.1
= control target key start
LH: loop header
LB: loop body
LE: loop exit
PB: predicated region body
PF: predicated region fallthrough
CT: control target
= control target key end

     0   :  { %s2385_s0 = inlined_call_operand.hbm [shape: f32[2,24,2,128], index: 0, kind: input, shape index: {}]   ;;  %s2386_s1 = inlined_call_operand.hbm [shape: f32[2,32,128], index: 1, kind: input, shape index: {}]   ;;  %s2387_s2 = inlined_call_operand.hbm [shape: f32[2,24,2,32], index: 2, kind: output, shape index: {}]  }
   0x1   :  { %2396 = sst [smem:[#allocation18_spill]] %s2385_s0 }
   0x2   :  { %7 = vsyncpa [#allocation5], 0 }
   0x3   :  { %9 = vsyncpa [#allocation5 + $0x1], 0 }
   0x4   :  { %10 = vsyncpa [#allocation8], 0 }
   0x5   :  { %12 = vsyncpa [#allocation8 + $0x1], 0 }
   0x6   :  { %13 = vsyncpa [#allocation6], 0 }
   0x7   :  { %15 = vsyncpa [#allocation6 + $0x1], 0  ;;  %s1876_s9 = smov 0   ;;  %s1878_s10 = smov 0  }
   0x8   :  { %s1880_s11 = smov 0   ;;  %s1882_s12 = smov 0  }
   0x9   :  { %s1884_s13 = smov 0   ;;  %s1886_s14 = smov 0  }
   0xa   :  { %s1888_s15 = smov 0   ;;  %s1890_s16 = smov 0  }
   0xb   :  { %s1892_s17 = smov 0   ;;  %s1894_s18 = smov 0  }
   0xc   :  { %s1896_s19 = smov 0  }
   0xd LB: > { %2397 = sst [smem:[#allocation13_spill]] %s1825_s14  ;;  %s1308_s20 = sadd.s32 4294967295, %s1845_s19   ;;  %s1845_s19 = sphi %s1896_s19, %s21_s19   ;;  %s1841_s18 = sphi %s1894_s18, %s2430_s18   ;;  %s1837_s17 = sphi %s1892_s17, %s2422_s17   ;;  %s1833_s16 = sphi %s1890_s16, %s2429_s16   ;;  %s1829_s15 = sphi %s1888_s15, %s2421_s15   ;;  %s1825_s14 = sphi %s1886_s14, %s2420_s14   ;;  %s1821_s13 = sphi %s1884_s13, %s2428_s13   ;;  %s1817_s12 = sphi %s1882_s12, %s2427_s12   ;;  %s1813_s11 = sphi %s1880_s11, %s2426_s11   ;;  %s1809_s10 = sphi %s1878_s10, %s2425_s10   ;;  %s1805_s9 = sphi %s1876_s9, %s2424_s9  }
   0xe   : > { %2398 = sst [smem:[#allocation14_spill]] %s1837_s17  ;;  %s1309_s21 = sadd.s32 4294967294, %s1845_s19  }
   0xf   : > { %s30_s22 = sadd.s32 1, %s1837_s17  ;;  %s33_s23 = sadd.s32 1, %s1841_s18 }
  0x10   : > { %p31_p0 = scmp.ge.s32.totalorder %s30_s22, 3  ;;  %s37_s24 = ssub.s32 2, %s1837_s17 }
  0x11   : > { %s38_s25 = smul.u32 %s1841_s18, %s37_s24  ;;  %s39_s26 = ssub.s32 1, %s1841_s18 }
  0x12   : > { %s2432_s22 = smov (%p31_p0, %s30_s22), 0  ;;  %s2434_s23 = smov (!%p31_p0, %s33_s23), %s1841_s18 }
  0x13   : > { %2399 = sst [smem:[#allocation15_spill]] %s2432_s22  ;;  %s40_s27 = smul.u32 %s1837_s17, %s39_s26 }
  0x14   : > { %s42_s28 = ssub.s32 2, %s2432_s22  ;;  %p35_p1 = scmp.ge.s32.totalorder %s2434_s23, 2 }
  0x15   : > { %s52_s29 = sadd.s32 1, %s1825_s14  ;;  %s1944_s30 = sadd.s32 %s40_s27, %s38_s25 }
  0x16   : > { %p59_p2 = scmp.ne.s32.totalorder %s1825_s14, %s1821_s13  ;;  %s2436_s23 = smov (%p35_p1, %s2434_s23), 0 }
  0x17   : > { %2400 = sst [smem:[#allocation16_spill]] %s2436_s23  ;;  %p2393_p3 = scmp.eq.s32.totalorder %s1845_s19, 0 }
  0x18   : > { %p65_p4 = scmp.ne.s32.totalorder %s1821_s13, %s1817_s12  ;;  %s43_s3 = smul.u32 %s42_s28, %s2436_s23 }
  0x19   : > { %s44_s4 = ssub.s32 1, %s2436_s23  ;;  %s1958_s6 = ssub.s32 %s1841_s18, %s2436_s23 }
  0x1a   : > { %s45_s5 = smul.u32 %s44_s4, %s2432_s22  ;;  %p1965_p5 = por %p2393_p3, %p59_p2 }
  0x1b   : > { %p1971_p6 = scmp.eq.s32.totalorder %s1308_s20, 0  ;;  %p127_p9 = scmp.eq.s32.totalorder %s1308_s20, 5 }
  0x1c   : > { %s46_s24 = sadd.s32 %s45_s5, %s43_s3  ;;  %p133_p11 = scmp.eq.s32.totalorder %s1309_s21, 5 }
  0x1d   : > { %s48_s25 = ssub.s32 %s1944_s30, %s46_s24  ;;  %p1982_p8 = por %p1971_p6, %p65_p4 }
  0x1e   : > { %s49_s27 = sor.u32 %s48_s25, %s1958_s6  ;;  %p1994_p12 = por %p127_p9, %p59_p2 }
  0x1f   : > { %p50_p10 = scmp.eq.s32.totalorder %s49_s27, 0  ;;  %p2004_p13 = por %p133_p11, %p65_p4 }
  0x20   : > { %s2404_s28 = scalar_select %p1994_p12, 1, 0 }
  0x21   : > { %s1999_s3 = scalar_select %p50_p10, %s1825_s14, %s52_s29  }
  0x22   : > { %s2406_s4 = scalar_select %p2004_p13, 1, 0 }
  0x23   : > { %2405 = sst [smem:[#allocation17_spill]] %s1999_s3  ;;  %p2392_p0 = scmp.lt.s32.totalorder %s1845_s19, 6 }
  0x24   : > { %s153_s5 = sand.u32 1, %s1825_s14   ;;  %s1313_s24 = sshll.u32 %s1944_s30, 3 }
  0x25   : > { %s1312_s20 = sshll.u32 %s153_s5, 4  ;;  %s1481_s25 = smul.u32 24, %s1841_s18 }
  0x26   : > { %s157_s27 = scalar_lea.vmem [#allocation4], %s1312_s20  ;;  %p2016_p1 = pnand %p2392_p0, %p1965_p5 }
  0x27   : > { %s171_s21 = sshll.u32 %s157_s27, 4  ;;  %s168_s29 = sadd.s32 %s1481_s25, %s1313_s24  ;;  %s2020_s21 = int_to_ptr.vmem [resolvable:$true] %s171_s21 }
  0x28   : > { %s1314_s22 = sshll.u32 %s168_s29, 5  ;;  %s2408_s0 = sld [smem:[#allocation18_spill]] }
  0x29   : > { %s2028_s30 = scalar_lea.sflag [#allocation5], %s153_s5  ;;  %p1667_p5 = pneg %p2016_p1 }
  0x2e   : > { %s2025_s14 = scalar_lea.hbm %s2408_s0, %s1314_s22  ;;  %s1670_s25 = scalar_lea.hbm %s2408_s0, 1536 }
  0x2f   : > { %s1665_s7 = scalar_lea.hbm %s2025_s14, 256 }
  0x30   : > { %p1666_p4 = scmp.ne.s32.totalorder %s2025_s14, %s1665_s7  ;;  %p1672_p11 = scmp.lt.s32.totalorder %s1670_s25, %s1665_s7 }
  0x32   : > { %p1668_p9 = pnand %p1667_p5, %p1666_p4 }
  0x34   : > { %p1669_p10 = pneg %p1668_p9 }
  0x36   : > { %p1674_p0 = pnand %p1672_p11, %p1669_p10 }
  0x38   : > { %1677 = shalt.err (!%p1674_p0)
}
  0x39   : > { %s1678_s17 = scalar_lea.vmem %s2020_s21, 256  ;;  %s1847_s22 = smov [#allocation4]  }
  0x3a   : > { %p1679_p3 = scmp.ne.s32.totalorder %s2020_s21, %s1678_s17  ;;  %s1683_s3 = sshll.u32 %s1847_s22, 4  ;;  %s1684_s3 = int_to_ptr.vmem [resolvable:$false] %s1683_s3 }
  0x3b   : > { %s1685_s5 = scalar_lea.vmem %s1684_s3, 512  ;;  %p1686_p4 = scmp.lt.s32.totalorder %s2020_s21, %s1684_s3 }
  0x3c   : > { %p1681_p7 = pnand %p1679_p3, %p1667_p5  ;;  %p1687_p9 = scmp.lt.s32.totalorder %s1685_s5, %s1678_s17 }
  0x3e   : > { %p1682_p2 = pneg %p1681_p7  ;;  %p1688_p13 = por %p1687_p9, %p1686_p4 }
  0x40   : > { %p1689_p12 = pnand %p1688_p13, %p1682_p2 }
  0x42   : > { %1692 = shalt.err (!%p1689_p12)
}
  0x43   : > { %s1848_s27 = smov 32   ;;  %s1849_s29 = smov 2  }
  0x44   : > { %1492 = dma.hbm_to_vmem [thread:$0]  (!%p2016_p1), %s2025_s14, 256, %s2020_s21, %s2028_s30, %s1848_s27, %s1848_s27, %s1849_s29  }
  0x45   : > { %p200_p3 = scmp.lt.s32.totalorder %s1845_s19, 7  ;;  %p2409_p7 = scmp.ge.s32.totalorder %s1845_s19, 1 }
  0x46   : > { %s78_s24 = sadd.s32 1, %s1813_s11  ;;  %p85_p13 = scmp.ne.s32.totalorder %s1813_s11, %s1809_s10 }
  0x47   : > { %p2048_p12 = pnand %p2409_p7, %p200_p3  ;;  %p2411_p0 = scmp.eq.s32.totalorder %s1958_s6, 0 }
  0x48   : > { %p2412_p2 = scmp.eq.s32.totalorder %s1845_s19, 0  ;;  %p91_p10 = scmp.ne.s32.totalorder %s1809_s10, %s1805_s9 }
  0x49   : > { %s2058_s20 = scalar_select %p2411_p0, %s1813_s11, %s78_s24  }
  0x4a   : > { %p87_p5 = por %p85_p13, %p2412_p2  ;;  %s181_s25 = sand.u32 1, %s1813_s11  }
  0x4b   : > { %s1352_s17 = sshll.u32 %s1841_s18, 9  ;;  %p2068_p11 = por %p91_p10, %p1971_p6 }
  0x4c   : > { %s1315_s14 = sshll.u32 %s181_s25, 5  ;;  %s191_s22 = scalar_lea.hbm %s2386_s1, %s1352_s17 }
  0x4d   : > { %p2414_p1 = scmp.lt.s32.totalorder %s1845_s19, 6  ;;  %s185_s3 = scalar_lea.vmem [#allocation7], %s1315_s14 }
  0x4e   : > { %s192_s9 = sshll.u32 %s185_s3, 4  ;;  %s182_s5 = scalar_lea.sflag [#allocation8], %s181_s25  ;;  %s193_s9 = int_to_ptr.vmem [resolvable:$true] %s192_s9 }
  0x4f   : > { %p2077_p4 = pnand %p2414_p1, %p87_p5  ;;  %s1706_s8 = scalar_lea.vmem %s193_s9, 512 }
  0x50   : > { %p1707_p9 = scmp.ne.s32.totalorder %s193_s9, %s1706_s8  ;;  %s1850_s27 = smov [#allocation7]  }
  0x51   : > { %p1695_p6 = pneg %p2077_p4  ;;  %s1711_s29 = sshll.u32 %s1850_s27, 4  ;;  %s1712_s29 = int_to_ptr.vmem [resolvable:$false] %s1711_s29 }
  0x52   : > { %s1713_s24 = scalar_lea.vmem %s1712_s29, 1024  ;;  %p1714_p13 = scmp.lt.s32.totalorder %s193_s9, %s1712_s29 }
  0x53   : > { %p1709_p3 = pnand %p1707_p9, %p1695_p6  ;;  %p1715_p0 = scmp.lt.s32.totalorder %s1713_s24, %s1706_s8 }
  0x55   : > { %p1710_p7 = pneg %p1709_p3  ;;  %p1716_p2 = por %p1715_p0, %p1714_p13 }
  0x57   : > { %p1717_p5 = pnand %p1716_p2, %p1710_p7 }
  0x59   : > { %1720 = shalt.err (!%p1717_p5)
}
  0x5a   : > { %s1851_s17 = smov 128   ;;  %s1852_s14 = smov 8  }
  0x5b   : > { %1495 = dma.hbm_to_vmem [thread:$0]  (!%p2077_p4), %s191_s22, 512, %s193_s9, %s182_s5, %s1851_s17, %s1851_s17, %s1852_s14  }
  0x5c   : > { %204 = sbr.rel (%p2048_p12) target bundleno = 5646 (0x160e), region = 28  ;;  %s2088_s25 = sand.u32 (!%p2048_p12), 1, %s1821_s13  }
  0x5d   : > { %s1319_s21 = sshll.u32 (!%p2048_p12), %s2088_s25, 4  ;;  %s207_s30 = scalar_lea.sflag (!%p2048_p12), [#allocation5], %s2088_s25 }
  0x5e   : > { %s2092_s3 = scalar_lea.vmem (!%p2048_p12), [#allocation4], %s1319_s21 }
  0x61   : > { %1792 = dma.done.wait (%p1982_p8), %s207_s30, 256  }
  0x62   : > { %1794 = vsyncadd (%p1982_p8), %s207_s30, 4294967040  ;;  %s215_s22 = sand.u32 1, %s1809_s10  }
  0x63   : > { %s1320_s7 = sshll.u32 %s215_s22, 5  ;;  %s216_s6 = scalar_lea.sflag [#allocation8], %s215_s22 }
  0x64   : > { %s219_s9 = scalar_lea.vmem [#allocation7], %s1320_s7 }
  0x65   : > { %1796 = dma.done.wait (%p2068_p11), %s216_s6, 512  }
  0x66   : > { %1798 = vsyncadd (%p2068_p11), %s216_s6, 4294966784  ;;  %s2103_s5 = scalar_lea.vmem [#allocation9], %s1319_s21  ;;  %p1322_p12 = scmp.ne.s32.totalorder %s1829_s15, 0 }
  0x68   : > { %260 = sbr.rel (%p1322_p12) target bundleno = 111 (0x6f), region = 40 }
  0x6d   : > { %vm261_vm0 = vcmask 254976   ;;  %v1853_v0 = vmov 0.0  }
  0x6e   : > { %262 = vst.msk [vmem:[#allocation2] sm:$0x3] %vm261_vm0, %v1853_v0  ;;  %263 = vst.msk [vmem:[#allocation3] sm:$0x3] %vm261_vm0, %v1853_v0 }
  0x6f PF: > { %v2106_v1 = vld [vmem:[%s219_s9 + $0x18] sm:$0xff]  ;;  %v1854_v2 = vmov 0.0   ;;  %v2109_v3 = vld [vmem:[%s219_s9 + $0x10] sm:$0xff]  ;;  %vm1855_vm1 = vmmov 0   ;;  %v2116_v4 = vld [vmem:[%s219_s9 + $0x8] sm:$0xff]  ;;  %vm275_vm2 = vcmask 261120  }
  0x70   : > { %1393 = vmatprep.subr.mxu0 %v1854_v2  ;;  %1401 = vmatprep.mubr.msk.f32.mxu0 %vm1855_vm1, %v1854_v2  ;;  %v2122_v5 = vld [vmem:[%s219_s9] sm:$0xff]  ;;  %p270_p8 = scmp.eq.s32.totalorder %s1833_s16, 0  ;;  %s1856_s27 = smov 64   ;;  %vm383_vm3 = vcmask 254976  }
  0x71   : > { %1394 = vmatpush3.msra.mxu0 %v2106_v1  ;;  %1404 = vmatprep.subr.mxu1 %v1854_v2  ;;  %s2395_s29 = smov 32   ;;  %p2416_p11 = scmp.ne.s32.totalorder %s2404_s28, 0 }
  0x72   : > { %1395 = vmatprep.subr.mxu0 %v1854_v2  ;;  %1405 = vmatpush3.msra.mxu1 %v2106_v1  ;;  %s2150_s26 = scalar_select %p270_p8, 0, 7 }
  0x73   : > { %1396 = vmatpush3.msra.mxu0 %v2109_v3  ;;  %1406 = vmatprep.subr.mxu1 %v1854_v2  ;;  %s2178_s17 = scalar_select %p270_p8, 1, 6 }
  0x74   : > { %1397 = vmatprep.subr.mxu0 %v1854_v2  ;;  %1407 = vmatpush3.msra.mxu1 %v2109_v3  ;;  %s1323_s23 = sshll.u32 %s2150_s26, 1 }
  0x75   : > { %1398 = vmatpush3.msra.mxu0 %v2116_v4  ;;  %v268_v6 = vld [vmem:[#allocation2] sm:$0x3]  ;;  %1408 = vmatprep.subr.mxu1 %v1854_v2  ;;  %s273_s8 = scalar_lea.vmem %s2092_s3, %s1323_s23 [#allocation4]  ;;  %v269_v12 = vld [vmem:[#allocation3] sm:$0x3]  ;;  %s382_s24 = scalar_lea.vmem %s2103_s5, %s1323_s23 [#allocation9] }
  0x76   : > { %1399 = vmatprep.subr.mxu0 %v1854_v2  ;;  %1409 = vmatpush3.msra.mxu1 %v2116_v4  ;;  %v274_v7 = vld [vmem:[%s273_s8] sm:$0x3]  ;;  %s1326_s14 = sshll.u32 %s2178_s17, 1 }
  0x77   : > { %1400 = vmatpush3.msra.mxu0 %v2122_v5  ;;  %1410 = vmatprep.subr.mxu1 %v1854_v2  ;;  %s387_s21 = scalar_lea.vmem %s2092_s3, %s1326_s14 [#allocation4]  ;;  %s490_s30 = scalar_lea.vmem %s2103_s5, %s1326_s14 [#allocation9] }
  0x78   : > { %1402 = vmatmul.mubr.msk.f32.vlgmr.msra.gmra.mxu0 %vm275_vm2, %v268_v6  ;;  %1411 = vmatpush3.msra.mxu1 %v2122_v5  ;;  %v388_v27 = vld [vmem:[%s387_s21] sm:$0x3]  ;;  %s2201_s22 = scalar_select %p270_p8, 2, 5 }
  0x79   : > { %1412 = vmatprep.mubr.msk.f32.mxu1 %vm1855_vm1, %v1854_v2  ;;  %1415 = vmatprep.subr.mxu0 %v1854_v2  ;;  %s2224_s26 = scalar_select %p270_p8, 3, 4 }
  0x7a   : > { %1416 = vmatpush3.msra.mxu0 %v2106_v1  ;;  %1423 = vmatprep.mubr.msk.f32.mxu0 %vm1855_vm1, %v1854_v2  ;;  %s1329_s7 = sshll.u32 %s2201_s22, 1 }
  0x7b   : > { %1417 = vmatprep.subr.mxu0 %v1854_v2  ;;  %1426 = vmatprep.subr.mxu1 %v1854_v2  ;;  %s494_s6 = scalar_lea.vmem %s2092_s3, %s1329_s7 [#allocation4]  ;;  %s597_s9 = scalar_lea.vmem %s2103_s5, %s1329_s7 [#allocation9] }
  0x7c   : > { %1418 = vmatpush3.msra.mxu0 %v2109_v3  ;;  %v495_v45 = vld [vmem:[%s494_s6] sm:$0x3]  ;;  %s1332_s23 = sshll.u32 %s2224_s26, 1 }
  0x7d   : > { %1419 = vmatprep.subr.mxu0 %v1854_v2  ;;  %s601_s8 = scalar_lea.vmem %s2092_s3, %s1332_s23 [#allocation4] }
  0x7e   : > { %1420 = vmatpush3.msra.mxu0 %v2116_v4  ;;  %v602_v63 = vld [vmem:[%s601_s8] sm:$0x3]  ;;  %s2246_s17 = scalar_select %p270_p8, 4, 3 }
  0x7f   : > { %1421 = vmatprep.subr.mxu0 %v1854_v2  ;;  %s2268_s22 = scalar_select %p270_p8, 5, 2 }
  0x80   : > { %1422 = vmatpush3.msra.mxu0 %v2122_v5  ;;  %s1335_s14 = sshll.u32 %s2246_s17, 1 }
  0x81   : > { %1437 = vmatprep.subr.mxu0 %v1854_v2  ;;  %s708_s21 = scalar_lea.vmem %s2092_s3, %s1335_s14 [#allocation4]  ;;  %s1338_s7 = sshll.u32 %s2268_s22, 1 }
  0x82   : > { %s815_s6 = scalar_lea.vmem %s2092_s3, %s1338_s7 [#allocation4]  ;;  %s1150_s22 = ssub.s32 1, %s1833_s16 }
  0x83   : > { %s2281_s26 = scalar_select %p270_p8, 6, 1 }
  0x84   : > { %s2294_s17 = scalar_select %p270_p8, 7, 0 }
 0x138   : > { %v345_v8 = vpop.f32.mrf.mxu0 }
 0x139   : > { %v349_v9 = vadd.f32 %v345_v8, %v274_v7 }
 0x13a   : > { %v1403_v10 = vpop.f32.mrf.mxu0 }
 0x13b   : > { %1601 = vtanh.f32 %v349_v9  ;;  %v1325_v13 = vmul.f32 -1.442695, %v349_v9 }
 0x13d   : > { %1603 = vpow2.f32 %v1325_v13 }
 0x148   : > { %v1602_v11 = vpop.eup %1601 }
 0x149   : > { %363 = vrot.lane.b32.xlu0 %v1602_v11, %s1856_s27 }
 0x14a   : > { %v1604_v14 = vpop.eup %1603 }
 0x14b   : > { %v353_v15 = vadd.f32 1.0, %v1604_v14 }
 0x14d   : > { %358 = vrot.lane.b32.xlu0 %v269_v12, %s2395_s29  ;;  %1605 = vrcp.f32 %v353_v15 }
 0x15a   : > { %v1606_v16 = vpop.eup %1605 }
 0x1bb   : > { %v364_v17 = vpop.permute.xlu0 %363 }
 0x1bc   : > { %v366_v18 = vmul.f32 %v1606_v16, %v364_v17 }
 0x1be   : > { %368 = vrot.lane.b32.xlu1 %v366_v18, %s2395_s29 }
 0x1bf   : > { %v359_v19 = vpop.permute.xlu0 %358 }
 0x1c0   : > { %v361_v20 = vmul.f32 %v1606_v16, %v359_v19 }
 0x230   : > { %v369_v21 = vpop.permute.xlu1 %368 }
 0x231   : > { %v371_v22 = vadd.f32 %v369_v21, %v361_v20 }
 0x233   : > { %1607 = vtanh.f32 %v371_v22 }
 0x240   : > { %v1608_v23 = vpop.eup %1607 }
 0x241   : > { %374 = vrot.lane.b32.xlu1 %v1608_v23, %s1856_s27 }
 0x2b3   : > { %v375_v24 = vpop.permute.xlu1 %374 }
 0x2b4   : > { %v377_v25 = vmul.f32 %v1606_v16, %v375_v24 }
 0x2b6   : > { %379 = vrot.lane.b32.xlu0 %v377_v25, %s2395_s29 }
 0x328   : > { %v380_v26 = vpop.permute.xlu0 %379 }
 0x329   : > { %384 = vst.msk [vmem:[%s382_s24] sm:$0x3] %vm383_vm3, %v380_v26  ;;  %1413 = vmatmul.mubr.msk.f32.vlgmr.msra.gmra.mxu1 %vm275_vm2, %v380_v26  ;;  %s704_s24 = scalar_lea.vmem %s2103_s5, %s1332_s23 [#allocation9]  ;;  %s1341_s23 = sshll.u32 %s2281_s26, 1 }
 0x32a   : > { %1427 = vmatpush3.msra.mxu1 %v2106_v1  ;;  %1434 = vmatprep.mubr.msk.f32.mxu1 %vm1855_vm1, %v1854_v2  ;;  %s922_s8 = scalar_lea.vmem %s2092_s3, %s1341_s23 [#allocation4] }
 0x32b   : > { %1428 = vmatprep.subr.mxu1 %v1854_v2 }
 0x32c   : > { %1429 = vmatpush3.msra.mxu1 %v2109_v3 }
 0x32d   : > { %1430 = vmatprep.subr.mxu1 %v1854_v2 }
 0x32e   : > { %1431 = vmatpush3.msra.mxu1 %v2116_v4 }
 0x32f   : > { %1432 = vmatprep.subr.mxu1 %v1854_v2 }
 0x330   : > { %1433 = vmatpush3.msra.mxu1 %v2122_v5 }
 0x331   : > { %1448 = vmatprep.subr.mxu1 %v1854_v2 }
 0x3e9   : > { %v457_v28 = vpop.f32.mrf.mxu1 }
 0x3ea   : > { %v461_v29 = vadd.f32 %v457_v28, %v388_v27 }
 0x3eb   : > { %v1414_v30 = vpop.f32.mrf.mxu1 }
 0x3ec   : > { %1609 = vtanh.f32 %v461_v29  ;;  %v1328_v32 = vmul.f32 -1.442695, %v461_v29 }
 0x3ee   : > { %1611 = vpow2.f32 %v1328_v32 }
 0x3f9   : > { %v1610_v31 = vpop.eup %1609 }
 0x3fa   : > { %471 = vrot.lane.b32.xlu1 %v1610_v31, %s1856_s27 }
 0x3fb   : > { %v1612_v33 = vpop.eup %1611 }
 0x3fc   : > { %v465_v34 = vadd.f32 1.0, %v1612_v33 }
 0x3fe   : > { %1613 = vrcp.f32 %v465_v34 }
 0x40b   : > { %v1614_v35 = vpop.eup %1613 }
 0x40c   : > { %v469_v38 = vmul.f32 %v1614_v35, %v371_v22  ;;  %v709_v22 = vld [vmem:[%s708_s21] sm:$0x3] }
 0x46c   : > { %v472_v36 = vpop.permute.xlu1 %471 }
 0x46d   : > { %v474_v37 = vmul.f32 %v1614_v35, %v472_v36 }
 0x46f   : > { %476 = vrot.lane.b32.xlu0 %v474_v37, %s2395_s29 }
 0x4e1   : > { %v477_v39 = vpop.permute.xlu0 %476 }
 0x4e2   : > { %v479_v40 = vadd.f32 %v477_v39, %v469_v38 }
 0x4e4   : > { %1615 = vtanh.f32 %v479_v40 }
 0x4f1   : > { %v1616_v41 = vpop.eup %1615 }
 0x4f2   : > { %482 = vrot.lane.b32.xlu1 %v1616_v41, %s1856_s27 }
 0x564   : > { %v483_v42 = vpop.permute.xlu1 %482 }
 0x565   : > { %v485_v43 = vmul.f32 %v1614_v35, %v483_v42 }
 0x567   : > { %487 = vrot.lane.b32.xlu0 %v485_v43, %s2395_s29 }
 0x5d9   : > { %v488_v44 = vpop.permute.xlu0 %487 }
 0x5da   : > { %491 = vst.msk [vmem:[%s490_s30] sm:$0x3] %vm383_vm3, %v488_v44  ;;  %1424 = vmatmul.mubr.msk.f32.vlgmr.msra.gmra.mxu0 %vm275_vm2, %v488_v44  ;;  %s811_s30 = scalar_lea.vmem %s2103_s5, %s1335_s14 [#allocation9]  ;;  %s1344_s14 = sshll.u32 %s2294_s17, 1 }
 0x5db   : > { %1438 = vmatpush3.msra.mxu0 %v2106_v1  ;;  %1445 = vmatprep.mubr.msk.f32.mxu0 %vm1855_vm1, %v1854_v2  ;;  %s1029_s21 = scalar_lea.vmem %s2092_s3, %s1344_s14 [#allocation4]  ;;  %s1858_s3 = smov 96  }
 0x5dc   : > { %1439 = vmatprep.subr.mxu0 %v1854_v2 }
 0x5dd   : > { %1440 = vmatpush3.msra.mxu0 %v2109_v3 }
 0x5de   : > { %1441 = vmatprep.subr.mxu0 %v1854_v2 }
 0x5df   : > { %1442 = vmatpush3.msra.mxu0 %v2116_v4 }
 0x5e0   : > { %1443 = vmatprep.subr.mxu0 %v1854_v2 }
 0x5e1   : > { %1444 = vmatpush3.msra.mxu0 %v2122_v5 }
 0x5e2   : > { %1459 = vmatprep.subr.mxu0 %v1854_v2 }
 0x69a   : > { %v564_v46 = vpop.f32.mrf.mxu0 }
 0x69b   : > { %v568_v47 = vadd.f32 %v564_v46, %v495_v45 }
 0x69c   : > { %v1425_v48 = vpop.f32.mrf.mxu0 }
 0x69d   : > { %1617 = vtanh.f32 %v568_v47  ;;  %v1331_v50 = vmul.f32 -1.442695, %v568_v47 }
 0x69f   : > { %1619 = vpow2.f32 %v1331_v50 }
 0x6aa   : > { %v1618_v49 = vpop.eup %1617 }
 0x6ab   : > { %578 = vrot.lane.b32.xlu1 %v1618_v49, %s1856_s27 }
 0x6ac   : > { %v1620_v51 = vpop.eup %1619 }
 0x6ad   : > { %v572_v52 = vadd.f32 1.0, %v1620_v51 }
 0x6af   : > { %1621 = vrcp.f32 %v572_v52 }
 0x6bc   : > { %v1622_v53 = vpop.eup %1621 }
 0x6bd   : > { %v576_v56 = vmul.f32 %v1622_v53, %v479_v40 }
 0x71d   : > { %v579_v54 = vpop.permute.xlu1 %578 }
 0x71e   : > { %v581_v55 = vmul.f32 %v1622_v53, %v579_v54 }
 0x720   : > { %583 = vrot.lane.b32.xlu0 %v581_v55, %s2395_s29 }
 0x792   : > { %v584_v57 = vpop.permute.xlu0 %583 }
 0x793   : > { %v586_v58 = vadd.f32 %v584_v57, %v576_v56 }
 0x795   : > { %1623 = vtanh.f32 %v586_v58 }
 0x7a2   : > { %v1624_v59 = vpop.eup %1623 }
 0x7a3   : > { %589 = vrot.lane.b32.xlu1 %v1624_v59, %s1856_s27 }
 0x815   : > { %v590_v60 = vpop.permute.xlu1 %589 }
 0x816   : > { %v592_v61 = vmul.f32 %v1622_v53, %v590_v60  ;;  %v923_v53 = vld [vmem:[%s922_s8] sm:$0x3] }
 0x818   : > { %594 = vrot.lane.b32.xlu0 %v592_v61, %s2395_s29 }
 0x88a   : > { %v595_v62 = vpop.permute.xlu0 %594 }
 0x88b   : > { %598 = vst.msk [vmem:[%s597_s9] sm:$0x3] %vm383_vm3, %v595_v62  ;;  %1435 = vmatmul.mubr.msk.f32.vlgmr.msra.gmra.mxu1 %vm275_vm2, %v595_v62  ;;  %s918_s9 = scalar_lea.vmem %s2103_s5, %s1338_s7 [#allocation9] }
 0x88c   : > { %1449 = vmatpush3.msra.mxu1 %v2106_v1  ;;  %1456 = vmatprep.mubr.msk.f32.mxu1 %vm1855_vm1, %v1854_v2 }
 0x88d   : > { %1450 = vmatprep.subr.mxu1 %v1854_v2 }
 0x88e   : > { %1451 = vmatpush3.msra.mxu1 %v2109_v3 }
 0x88f   : > { %1452 = vmatprep.subr.mxu1 %v1854_v2 }
 0x890   : > { %1453 = vmatpush3.msra.mxu1 %v2116_v4 }
 0x891   : > { %1454 = vmatprep.subr.mxu1 %v1854_v2 }
 0x892   : > { %1455 = vmatpush3.msra.mxu1 %v2122_v5 }
 0x893   : > { %1470 = vmatprep.subr.mxu1 %v1854_v2 }
 0x94b   : > { %v671_v0 = vpop.f32.mrf.mxu1 }
 0x94c   : > { %v675_v6 = vadd.f32 %v671_v0, %v602_v63 }
 0x94d   : > { %v1436_v7 = vpop.f32.mrf.mxu1 }
 0x94e   : > { %1625 = vtanh.f32 %v675_v6  ;;  %v1334_v9 = vmul.f32 -1.442695, %v675_v6 }
 0x950   : > { %1627 = vpow2.f32 %v1334_v9 }
 0x95b   : > { %v1626_v8 = vpop.eup %1625 }
 0x95c   : > { %685 = vrot.lane.b32.xlu1 %v1626_v8, %s1856_s27 }
 0x95d   : > { %v1628_v10 = vpop.eup %1627 }
 0x95e   : > { %v679_v11 = vadd.f32 1.0, %v1628_v10 }
 0x960   : > { %1629 = vrcp.f32 %v679_v11 }
 0x96d   : > { %v1630_v12 = vpop.eup %1629 }
 0x96e   : > { %v683_v15 = vmul.f32 %v1630_v12, %v586_v58 }
 0x9ce   : > { %v686_v13 = vpop.permute.xlu1 %685 }
 0x9cf   : > { %v688_v14 = vmul.f32 %v1630_v12, %v686_v13 }
 0x9d1   : > { %690 = vrot.lane.b32.xlu0 %v688_v14, %s2395_s29 }
 0xa43   : > { %v691_v16 = vpop.permute.xlu0 %690 }
 0xa44   : > { %v693_v17 = vadd.f32 %v691_v16, %v683_v15 }
 0xa46   : > { %1631 = vtanh.f32 %v693_v17 }
 0xa53   : > { %v1632_v18 = vpop.eup %1631 }
 0xa54   : > { %696 = vrot.lane.b32.xlu1 %v1632_v18, %s1856_s27 }
 0xac6   : > { %v697_v19 = vpop.permute.xlu1 %696 }
 0xac7   : > { %v699_v20 = vmul.f32 %v1630_v12, %v697_v19  ;;  %v1030_v12 = vld [vmem:[%s1029_s21] sm:$0x3]  ;;  %s1132_s21 = scalar_lea.vmem %s2103_s5, %s1344_s14 [#allocation9] }
 0xac9   : > { %701 = vrot.lane.b32.xlu0 %v699_v20, %s2395_s29 }
 0xb3b   : > { %v702_v21 = vpop.permute.xlu0 %701 }
 0xb3c   : > { %705 = vst.msk [vmem:[%s704_s24] sm:$0x3] %vm383_vm3, %v702_v21  ;;  %1446 = vmatmul.mubr.msk.f32.vlgmr.msra.gmra.mxu0 %vm275_vm2, %v702_v21  ;;  %s1025_s24 = scalar_lea.vmem %s2103_s5, %s1341_s23 [#allocation9] }
 0xb3d   : > { %1460 = vmatpush3.msra.mxu0 %v2106_v1  ;;  %1467 = vmatprep.mubr.msk.f32.mxu0 %vm1855_vm1, %v1854_v2 }
 0xb3e   : > { %1461 = vmatprep.subr.mxu0 %v1854_v2 }
 0xb3f   : > { %1462 = vmatpush3.msra.mxu0 %v2109_v3 }
 0xb40   : > { %1463 = vmatprep.subr.mxu0 %v1854_v2 }
 0xb41   : > { %1464 = vmatpush3.msra.mxu0 %v2116_v4 }
 0xb42   : > { %1465 = vmatprep.subr.mxu0 %v1854_v2 }
 0xb43   : > { %1466 = vmatpush3.msra.mxu0 %v2122_v5 }
 0xbfc   : > { %v778_v23 = vpop.f32.mrf.mxu0 }
 0xbfd   : > { %v782_v24 = vadd.f32 %v778_v23, %v709_v22 }
 0xbfe   : > { %v1447_v25 = vpop.f32.mrf.mxu0 }
 0xbff   : > { %1633 = vtanh.f32 %v782_v24  ;;  %v1337_v27 = vmul.f32 -1.442695, %v782_v24 }
 0xc01   : > { %1635 = vpow2.f32 %v1337_v27 }
 0xc0c   : > { %v1634_v26 = vpop.eup %1633 }
 0xc0d   : > { %792 = vrot.lane.b32.xlu1 %v1634_v26, %s1856_s27 }
 0xc0e   : > { %v1636_v28 = vpop.eup %1635 }
 0xc0f   : > { %v786_v29 = vadd.f32 1.0, %v1636_v28 }
 0xc11   : > { %1637 = vrcp.f32 %v786_v29 }
 0xc1e   : > { %v1638_v30 = vpop.eup %1637 }
 0xc1f   : > { %v790_v33 = vmul.f32 %v1638_v30, %v693_v17 }
 0xc7f   : > { %v793_v31 = vpop.permute.xlu1 %792 }
 0xc80   : > { %v795_v32 = vmul.f32 %v1638_v30, %v793_v31 }
 0xc82   : > { %797 = vrot.lane.b32.xlu0 %v795_v32, %s2395_s29 }
 0xcf4   : > { %v798_v34 = vpop.permute.xlu0 %797 }
 0xcf5   : > { %v800_v35 = vadd.f32 %v798_v34, %v790_v33 }
 0xcf7   : > { %1639 = vtanh.f32 %v800_v35 }
 0xd04   : > { %v1640_v36 = vpop.eup %1639 }
 0xd05   : > { %803 = vrot.lane.b32.xlu1 %v1640_v36, %s1856_s27 }
 0xd77   : > { %v804_v37 = vpop.permute.xlu1 %803 }
 0xd78   : > { %v806_v38 = vmul.f32 %v1638_v30, %v804_v37 }
 0xd7a   : > { %808 = vrot.lane.b32.xlu0 %v806_v38, %s2395_s29 }
 0xdec   : > { %v809_v39 = vpop.permute.xlu0 %808 }
 0xded   : > { %812 = vst.msk [vmem:[%s811_s30] sm:$0x3] %vm383_vm3, %v809_v39  ;;  %1457 = vmatmul.mubr.msk.f32.vlgmr.msra.gmra.mxu1 %vm275_vm2, %v809_v39  ;;  %s1148_s30 = ssub.s32 2, %s1829_s15 }
 0xdee   : > { %1471 = vmatpush3.msra.mxu1 %v2106_v1  ;;  %1478 = vmatprep.mubr.msk.f32.mxu1 %vm1855_vm1, %v1854_v2  ;;  %v816_v1 = vld [vmem:[%s815_s6] sm:$0x3]  ;;  %s1149_s7 = smul.u32 %s1833_s16, %s1148_s30 }
 0xdef   : > { %1472 = vmatprep.subr.mxu1 %v1854_v2  ;;  %s1151_s6 = smul.u32 %s1829_s15, %s1150_s22  ;;  %s1141_s15 = scalar_lea.sflag [#allocation6], %s2088_s25 }
 0xdf0   : > { %1473 = vmatpush3.msra.mxu1 %v2109_v3 }
 0xdf1   : > { %1474 = vmatprep.subr.mxu1 %v1854_v2 }
 0xdf2   : > { %1475 = vmatpush3.msra.mxu1 %v2116_v4 }
 0xdf3   : > { %1476 = vmatprep.subr.mxu1 %v1854_v2 }
 0xdf4   : > { %1477 = vmatpush3.msra.mxu1 %v2122_v5 }
 0xead   : > { %v885_v40 = vpop.f32.mrf.mxu1 }
 0xeae   : > { %v889_v41 = vadd.f32 %v885_v40, %v816_v1 }
 0xeaf   : > { %v1458_v42 = vpop.f32.mrf.mxu1 }
 0xeb0   : > { %1641 = vtanh.f32 %v889_v41  ;;  %v1340_v43 = vmul.f32 -1.442695, %v889_v41 }
 0xeb2   : > { %1643 = vpow2.f32 %v1340_v43 }
 0xebd   : > { %v1642_v3 = vpop.eup %1641 }
 0xebe   : > { %899 = vrot.lane.b32.xlu1 %v1642_v3, %s1856_s27 }
 0xebf   : > { %v1644_v4 = vpop.eup %1643 }
 0xec0   : > { %v893_v2 = vadd.f32 1.0, %v1644_v4 }
 0xec2   : > { %1645 = vrcp.f32 %v893_v2 }
 0xecf   : > { %v1646_v5 = vpop.eup %1645 }
 0xed0   : > { %v897_v46 = vmul.f32 %v1646_v5, %v800_v35 }
 0xf30   : > { %v900_v44 = vpop.permute.xlu1 %899 }
 0xf31   : > { %v902_v45 = vmul.f32 %v1646_v5, %v900_v44 }
 0xf33   : > { %904 = vrot.lane.b32.xlu0 %v902_v45, %s2395_s29 }
 0xfa5   : > { %v905_v47 = vpop.permute.xlu0 %904 }
 0xfa6   : > { %v907_v48 = vadd.f32 %v905_v47, %v897_v46 }
 0xfa8   : > { %1647 = vtanh.f32 %v907_v48 }
 0xfb5   : > { %v1648_v49 = vpop.eup %1647 }
 0xfb6   : > { %910 = vrot.lane.b32.xlu1 %v1648_v49, %s1856_s27 }
0x1028   : > { %v911_v50 = vpop.permute.xlu1 %910 }
0x1029   : > { %v913_v51 = vmul.f32 %v1646_v5, %v911_v50 }
0x102b   : > { %915 = vrot.lane.b32.xlu0 %v913_v51, %s2395_s29 }
0x109d   : > { %v916_v52 = vpop.permute.xlu0 %915 }
0x109e   : > { %919 = vst.msk [vmem:[%s918_s9] sm:$0x3] %vm383_vm3, %v916_v52  ;;  %1468 = vmatmul.mubr.msk.f32.vlgmr.msra.gmra.mxu0 %vm275_vm2, %v916_v52  ;;  %s1152_s9 = sadd.s32 %s1151_s6, %s1149_s7 }
0x109f   : > { %s1348_s26 = sshll.u32 %s1152_s9, 3 }
0x115e   : > { %v992_v54 = vpop.f32.mrf.mxu0 }
0x115f   : > { %v996_v55 = vadd.f32 %v992_v54, %v923_v53 }
0x1160   : > { %v1469_v56 = vpop.f32.mrf.mxu0 }
0x1161   : > { %1649 = vtanh.f32 %v996_v55  ;;  %v1343_v58 = vmul.f32 -1.442695, %v996_v55 }
0x1163   : > { %1651 = vpow2.f32 %v1343_v58 }
0x116e   : > { %v1650_v57 = vpop.eup %1649 }
0x116f   : > { %1006 = vrot.lane.b32.xlu1 %v1650_v57, %s1856_s27 }
0x1170   : > { %v1652_v59 = vpop.eup %1651 }
0x1171   : > { %v1000_v60 = vadd.f32 1.0, %v1652_v59 }
0x1173   : > { %1653 = vrcp.f32 %v1000_v60 }
0x1180   : > { %v1654_v61 = vpop.eup %1653 }
0x1181   : > { %v1004_v0 = vmul.f32 %v1654_v61, %v907_v48 }
0x11e1   : > { %v1007_v62 = vpop.permute.xlu1 %1006 }
0x11e2   : > { %v1009_v63 = vmul.f32 %v1654_v61, %v1007_v62 }
0x11e4   : > { %1011 = vrot.lane.b32.xlu0 %v1009_v63, %s2395_s29 }
0x1256   : > { %v1012_v6 = vpop.permute.xlu0 %1011 }
0x1257   : > { %v1014_v7 = vadd.f32 %v1012_v6, %v1004_v0 }
0x1259   : > { %1655 = vtanh.f32 %v1014_v7 }
0x1266   : > { %v1656_v8 = vpop.eup %1655 }
0x1267   : > { %1017 = vrot.lane.b32.xlu1 %v1656_v8, %s1856_s27 }
0x12d9   : > { %v1018_v9 = vpop.permute.xlu1 %1017 }
0x12da   : > { %v1020_v10 = vmul.f32 %v1654_v61, %v1018_v9 }
0x12dc   : > { %1022 = vrot.lane.b32.xlu0 %v1020_v10, %s2395_s29 }
0x134e   : > { %v1023_v11 = vpop.permute.xlu0 %1022 }
0x134f   : > { %1026 = vst.msk [vmem:[%s1025_s24] sm:$0x3] %vm383_vm3, %v1023_v11  ;;  %1479 = vmatmul.mubr.msk.f32.vlgmr.msra.gmra.mxu1 %vm275_vm2, %v1023_v11  ;;  %s1161_s24 = sshll.u32 %s2103_s5, 4  ;;  %s1859_s5 = smov [#allocation9]   ;;  %s2319_s24 = int_to_ptr.vmem [resolvable:$true] %s1161_s24 }
0x1350   : > { %s1725_s0 = sshll.u32 %s1859_s5, 4  ;;  %s1726_s0 = int_to_ptr.vmem [resolvable:$false] %s1725_s0 }
0x1351   : > { %s1727_s17 = scalar_lea.vmem %s1726_s0, 512  ;;  %p1728_p6 = scmp.lt.s32.totalorder %s2319_s24, %s1726_s0 }
0x140f   : > { %v1099_v13 = vpop.f32.mrf.mxu1 }
0x1410   : > { %v1103_v14 = vadd.f32 %v1099_v13, %v1030_v12 }
0x1411   : > { %v1480_v15 = vpop.f32.mrf.mxu1 }
0x1412   : > { %1657 = vtanh.f32 %v1103_v14  ;;  %v1346_v17 = vmul.f32 -1.442695, %v1103_v14 }
0x1414   : > { %1659 = vpow2.f32 %v1346_v17 }
0x141f   : > { %v1658_v16 = vpop.eup %1657 }
0x1420   : > { %1113 = vrot.lane.b32.xlu1 %v1658_v16, %s1856_s27 }
0x1421   : > { %v1660_v18 = vpop.eup %1659 }
0x1422   : > { %v1107_v19 = vadd.f32 1.0, %v1660_v18 }
0x1424   : > { %1661 = vrcp.f32 %v1107_v19 }
0x1431   : > { %v1662_v20 = vpop.eup %1661 }
0x1432   : > { %v1111_v23 = vmul.f32 %v1662_v20, %v1014_v7 }
0x1492   : > { %v1114_v21 = vpop.permute.xlu1 %1113 }
0x1493   : > { %v1116_v22 = vmul.f32 %v1662_v20, %v1114_v21 }
0x1495   : > { %1118 = vrot.lane.b32.xlu0 %v1116_v22, %s2395_s29 }
0x1507   : > { %v1119_v24 = vpop.permute.xlu0 %1118 }
0x1508   : > { %v1121_v25 = vadd.f32 %v1119_v24, %v1111_v23 }
0x150a   : > { %1663 = vtanh.f32 %v1121_v25 }
0x1517   : > { %v1664_v26 = vpop.eup %1663 }
0x1518   : > { %1124 = vrot.lane.b32.xlu1 %v1664_v26, %s1856_s27  ;;  %s1482_s27 = smul.u32 24, %s1833_s16  ;;  %s1721_s16 = scalar_lea.vmem %s2319_s24, 256 }
0x1519   : > { %p1722_p10 = scmp.ne.s32.totalorder %s2319_s24, %s1721_s16  ;;  %p1729_p9 = scmp.lt.s32.totalorder %s1727_s17, %s1721_s16 }
0x151a   : > { %s1158_s23 = sadd.s32 %s1482_s27, %s1348_s26 }
0x151b   : > { %s1349_s8 = sshll.u32 %s1158_s23, 5  ;;  %p1723_p1 = pnand %p1722_p10, %p2416_p11 }
0x151c   : > { %1136 = vrot.lane.b32.xlu1 %v1121_v25, %s1858_s3  ;;  %p1730_p3 = por %p1729_p9, %p1728_p6 }
0x151d   : > { %p1724_p4 = pneg %p1723_p1 }
0x151f   : > { %p1731_p7 = pnand %p1730_p3, %p1724_p4 }
0x158a   : > { %v1125_v27 = vpop.permute.xlu1 %1124 }
0x158b   : > { %v1127_v28 = vmul.f32 %v1662_v20, %v1125_v27 }
0x158d   : > { %1129 = vrot.lane.b32.xlu0 %v1127_v28, %s2395_s29  ;;  %s2317_s29 = scalar_lea.hbm %s2387_s2, %s1349_s8 }
0x158e   : > { %v1137_v29 = vpop.permute.xlu1 %1136 }
0x158f   : > { %1139 = vst.msk [vmem:[#allocation3] sm:$0x3] %vm383_vm3, %v1137_v29 }
0x15ff   : > { %v1130_v30 = vpop.permute.xlu0 %1129 }
0x1600   : > { %1133 = vst.msk [vmem:[%s1132_s21] sm:$0x3] %vm383_vm3, %v1130_v30  ;;  %1134 = vst.msk [vmem:[#allocation2] sm:$0x3] %vm383_vm3, %v1130_v30 }
0x1601   : > { %1734 = shalt.err (!%p1731_p7)
}
0x1602   : > { %s1735_s14 = scalar_lea.hbm %s2317_s29, 256  ;;  %s1739_s7 = scalar_lea.hbm %s2387_s2, 1536 }
0x1603   : > { %p1736_p13 = scmp.ne.s32.totalorder %s2317_s29, %s1735_s14  ;;  %p1740_p5 = scmp.lt.s32.totalorder %s2317_s29, %s2387_s2 }
0x1604   : > { %p1741_p12 = scmp.lt.s32.totalorder %s1739_s7, %s1735_s14 }
0x1605   : > { %p1737_p0 = pnand %p1736_p13, %p2416_p11 }
0x1606   : > { %p1742_p8 = por %p1741_p12, %p1740_p5 }
0x1607   : > { %p1738_p2 = pneg %p1737_p0 }
0x1609   : > { %p1743_p10 = pnand %p1742_p8, %p1738_p2 }
0x160b   : > { %1746 = shalt.err (!%p1743_p10)
}
0x160c   : > { %s1860_s27 = smov 2   ;;  %s2417_s26 = smov 32  }
0x160d   : > { %1487 = dma.vmem_to_hbm [thread:$0]  (%p2416_p11), %s2319_s24, 256, %s2317_s29, %s1141_s15, %s2417_s26, %s2417_s26, %s1860_s27  }
0x160e PF: > { %p1501_p1 = scmp.ge.s32.totalorder %s1845_s19, 2  ;;  %s1176_s23 = sand.u32 1, %s1817_s12  }
0x160f   : > { %p2418_p4 = scmp.ne.s32.totalorder %s2406_s4, 0  ;;  %s1177_s8 = scalar_lea.sflag [#allocation6], %s1176_s23 }
0x1611   : > { %p1497_p6 = pnand %p1501_p1, %p2418_p4 }
0x1613   : > { %p1498_p9 = pneg %p1497_p6 }
0x1615   : > { %1800 = dma.done.wait (%p1498_p9), %s1177_s8, 256  }
0x1616   : > { %1802 = vsyncadd (%p1498_p9), %s1177_s8, 4294967040  ;;  %s21_s19 = sadd.s32 1, %s1845_s19   ;;  %s2419_s28 = sld [smem:[#allocation13_spill]] }
0x1617   : > { %p18_p3 = scmp.ge.s32.totalorder %s21_s19, 8   ;;  %s2420_s14 = sld [smem:[#allocation17_spill]] }
0x1618   : > { %s2421_s15 = sld [smem:[#allocation14_spill]]  ;;  %s2424_s9 = smov %s1809_s10 }
0x1619   : > { %s2422_s17 = sld [smem:[#allocation15_spill]]  ;;  %s2425_s10 = smov %s1813_s11 }
0x161a   : > { %s2423_s25 = sld [smem:[#allocation16_spill]]  ;;  %s2426_s11 = smov %s2058_s20 }
0x161b   : > { %s2427_s12 = smov %s1821_s13  ;;  %s2429_s16 = smov %s1841_s18 }
0x161c   : > { %s2428_s13 = smov %s2419_s28  ;;  %20 = sbr.rel (!%p18_p3) target bundleno = 13 (0xd), region = 106 }
0x1620   : > { %s2430_s18 = smov %s2423_s25 }
0x1621   :  { %1182 = vsyncpa [#allocation5], 1 }
0x1622   :  { %1184 = vsyncpa [#allocation5 + $0x1], 1 }
0x1623   :  { %1185 = vsyncpa [#allocation8], 1 }
0x1624   :  { %1187 = vsyncpa [#allocation8 + $0x1], 1 }
0x1625   :  { %1188 = vsyncpa [#allocation6], 1 }
0x1626   :  { %1190 = vsyncpa [#allocation6 + $0x1], 1 }

</bundles_post_ra>
